<compile_context>
chip_gen: v6e
topology: v6e:2x2x1
jax: 0.10.0
libtpu: 0.0.40
codegen_flags: <defaults>
</compile_context>

<pallas_src>
import math

import jax
import jax.numpy as jnp
from jax import lax
from jax.experimental import pallas as pl
from jax.experimental.pallas import tpu as pltpu


_SMALL_N_FAST_PATH = 512  # below this, launch overhead dominates -> plain einsum


def _round_up(v: int, m: int) -> int:
    return ((v + m - 1) // m) * m


def _linreg_kernel(w_ref, x_ref, o_ref):
    # w_ref: (1, d) resident weight; x_ref: (TILE_N, d) row tile;
    # o_ref: (1, TILE_N) lane-dense output tile.
    # NT contraction (same MXU path as q @ k^T): contract the feature dim of
    # both operands, f32 accumulation.
    o_ref[...] = lax.dot_general(
        w_ref[...],
        x_ref[...],
        dimension_numbers=(((1,), (1,)), ((), ())),
        preferred_element_type=jnp.float32,
    ).astype(o_ref.dtype)


def _squeeze_like_torch(result: jax.Array, n: int) -> jax.Array:
    # torch .squeeze() on a (1, 1) output returns a 0-d tensor.
    if n == 1:
        return result[0]
    return result


def linear_regression_forward(
    x: jax.Array, weight: jax.Array, *, tile_n: int = 2048
) -> jax.Array:
    """Equivalent of `nn.Linear(d, 1, bias=False)(x).squeeze()`.

    x:      (N, d)  float32
    weight: (1, d)  float32 (PyTorch nn.Linear weight layout, used as-is)
    returns (N,)    float32   (0-d array if N == 1, matching torch .squeeze())
    """
    n, d_in = x.shape
    assert weight.shape == (1, d_in)

    # Small-N fast path: custom-call launch + 128-row tiling would dominate.
    if n < _SMALL_N_FAST_PATH:
        result = jnp.einsum(
            "nd,od->n", x, weight, preferred_element_type=jnp.float32
        ).astype(x.dtype)
        return _squeeze_like_torch(result, n)

    # Batch tile: 128-row aligned, capped at tile_n, and capped again so the
    # grid keeps >= 2 steps when possible (keeps both v7x TensorCores fed).
    tile = min(tile_n, _round_up(n, 128))
    if pl.cdiv(n, tile) < 2 and n > 2 * 128:
        tile = _round_up(pl.cdiv(n, 2), 128)
    grid_len = pl.cdiv(n, tile)

    out = pl.pallas_call(
        _linreg_kernel,
        out_shape=jax.ShapeDtypeStruct((1, n), jnp.float32),
        grid_spec=pltpu.PrefetchScalarGridSpec(
            num_scalar_prefetch=0,
            grid=(grid_len,),
            in_specs=[
                # Weight: same block every step -> stays resident in VMEM.
                # Last dim == full array dim, so no lane padding required.
                pl.BlockSpec((1, d_in), lambda i: (0, 0)),
                # x: one unpadded row tile per grid step, auto double-buffered.
                # Ragged last tile handled by Pallas (edge rows are garbage but
                # the corresponding output lanes are never written back).
                pl.BlockSpec((tile, d_in), lambda i: (i, 0)),
            ],
            # Lane-dense output: N on the lane axis -> full-width vst.
            out_specs=pl.BlockSpec((1, tile), lambda i: (0, i)),
        ),
        compiler_params=pltpu.CompilerParams(
            # Independent batch tiles: lets v7x shard across its 2 TensorCores;
            # no-op on v5e/v6e (single TC).
            dimension_semantics=("parallel",),
            # 2048x1000 f32 tile ~= 7.8 MiB, double-buffered ~= 16 MiB: above
            # v5e's 16 MiB default scoped VMEM, comfortably under v7x's 64 MiB
            # physical VMEM per TC.
            vmem_limit_bytes=48 << 20,
        ),
        cost_estimate=pl.CostEstimate(
            flops=2 * n * d_in,
            transcendentals=0,
            bytes_accessed=4 * (n * d_in + d_in + n),
        ),
    )(weight, x)

    result = out[0, :]
    return _squeeze_like_torch(result, n)


if __name__ == "__main__":
    d = 1000  # matches the module's global `d`

    key = jax.random.PRNGKey(0)
    kw, kx_big, kx_small = jax.random.split(key, 3)

    # nn.Linear default init: U(-1/sqrt(d), 1/sqrt(d)); weight layout (1, d).
    bound = 1.0 / math.sqrt(d)
    weight = jax.random.uniform(
        kw, (1, d), dtype=jnp.float32, minval=-bound, maxval=bound
    )

    # Batch large enough to take the Pallas path (>= _SMALL_N_FAST_PATH):
    # 1024 x 1000 f32 = ~4 MB input, tile is capped to 512 -> a 2-step grid.
    batch = 1024
    x = jax.random.normal(kx_big, (batch, d), dtype=jnp.float32)
    out = linear_regression_forward(x, weight)
    out = jax.block_until_ready(out)
    ref = (x @ weight.T)[:, 0]
    assert out.shape == (batch,)
    assert jnp.allclose(out, ref, atol=1e-4, rtol=1e-4)

    # Small-batch fast path (matches the original 8-row demo).
    x_small = jax.random.normal(kx_small, (8, d), dtype=jnp.float32)
    out_small = jax.block_until_ready(linear_regression_forward(x_small, weight))
    ref_small = (x_small @ weight.T)[:, 0]
    assert out_small.shape == (8,)
    assert jnp.allclose(out_small, ref_small, atol=1e-4, rtol=1e-4)

    # Single-row squeeze-to-scalar semantics.
    out_one = jax.block_until_ready(
        linear_regression_forward(x_small[:1], weight)
    )
    assert out_one.shape == ()

    print("KERNEL_OK")
</pallas_src>

<mosaic_0001>
module attributes {stable_mosaic.version = 11 : i64} {
  func.func @_linreg_kernel(%arg0: i32, %arg1: memref<1x1000xf32, #tpu.memory_space<vmem>>, %arg2: memref<512x1000xf32, #tpu.memory_space<vmem>>, %arg3: memref<1x512xf32, #tpu.memory_space<vmem>>) attributes {dimension_semantics = [#tpu.dimension_semantics<parallel>], iteration_bounds = array<i64: 2>, scalar_prefetch = 0 : i64, scratch_operands = 0 : i64, tpu.core_type = #tpu.core_type<tc>, window_params = [{pipeline_mode = #tpu.pipeline_mode<synchronous>, transform_indices = @transform_0, window_bounds = array<i64: 1, 1000>}, {transform_indices = @transform_1, window_bounds = array<i64: 512, 1000>}, {transform_indices = @transform_2, window_bounds = array<i64: 1, 512>}]} {
    %c0 = arith.constant 0 : index
    %c0_0 = arith.constant 0 : index
    %0 = vector.load %arg1[%c0, %c0_0] : memref<1x1000xf32, #tpu.memory_space<vmem>>, vector<1x1000xf32>
    %c0_1 = arith.constant 0 : index
    %c0_2 = arith.constant 0 : index
    %1 = vector.load %arg2[%c0_1, %c0_2] : memref<512x1000xf32, #tpu.memory_space<vmem>>, vector<512x1000xf32>
    %cst = arith.constant dense<0.000000e+00> : vector<1x512xf32>
    %2 = tpu.matmul %0, %1, %cst {dimension_numbers = #tpu.dot_dimension_numbers<[1], [1], [0], [0], [0, 0, 1, 0], [], []>} : vector<1x1000xf32>, vector<512x1000xf32>, vector<1x512xf32> -> vector<1x512xf32>
    %c0_3 = arith.constant 0 : index
    %c0_4 = arith.constant 0 : index
    %3 = vector.load %arg3[%c0_3, %c0_4] : memref<1x512xf32, #tpu.memory_space<vmem>>, vector<1x512xf32>
    tpu.vector_store %arg3[%c0_3, %c0_4], %2 {strides = array<i32>} : memref<1x512xf32, #tpu.memory_space<vmem>>, vector<1x512xf32>,
    return
  }
  func.func @transform_0(%arg0: i32) -> (i32, i32) {
    %c0_i32 = arith.constant 0 : i32
    %c0_i32_0 = arith.constant 0 : i32
    %c0_i32_1 = arith.constant 0 : i32
    return %c0_i32, %c0_i32_0 : i32, i32
  }
  func.func @transform_1(%arg0: i32) -> (i32, i32) {
    %c0_i32 = arith.constant 0 : i32
    %c0_i32_0 = arith.constant 0 : i32
    return %arg0, %c0_i32 : i32, i32
  }
  func.func @transform_2(%arg0: i32) -> (i32, i32) {
    %c0_i32 = arith.constant 0 : i32
    %c0_i32_0 = arith.constant 0 : i32
    return %c0_i32, %arg0 : i32, i32
  }
}

</mosaic_0001>

<bundles_post_ra>
// kernel: tpu_custom_call.1
= control target key start
LH: loop header
LB: loop body
LE: loop exit
PB: predicated region body
PF: predicated region fallthrough
CT: control target
= control target key end

     0   :  { %7 = vsyncpa [#allocation3], 0  ;;  %s2498_s0 = inlined_call_operand.vmem [shape: f32[1,1000], index: 0, kind: input, shape index: {}]   ;;  %s2499_s1 = inlined_call_operand.vmem [shape: f32[1024,1000], index: 1, kind: input, shape index: {}]   ;;  %s2500_s2 = inlined_call_operand.hbm [shape: f32[1,1024], index: 2, kind: output, shape index: {}]  }
   0x1   :  { %9 = vsyncpa [#allocation3 + $0x1], 0  ;;  %s1773_s9 = smov 0   ;;  %s1775_s10 = smov 0  }
   0x2   :  { %s1777_s11 = smov 0   ;;  %s1779_s12 = smov 0  }
   0x3 LB: > { %s1571_s13 = sadd.s32 4294967295, %s1754_s12   ;;  %s1572_s14 = sadd.s32 4294967294, %s1754_s12   ;;  %s1754_s12 = sphi %s1779_s12, %s2506_s12   ;;  %s1750_s11 = sphi %s1777_s11, %s2505_s11   ;;  %s1746_s10 = sphi %s1775_s10, %s2504_s10   ;;  %s1742_s9 = sphi %s1773_s9, %s2503_s9  }
   0x4   : > { %s1796_s15 = sadd.s32 1, %s1754_s12   ;;  %s69_s16 = sadd.s32 1, %s1750_s11 }
   0x5   : > { %s66_s17 = ssub.s32 %s1754_s12, %s1796_s15  ;;  %p79_p0 = scmp.ne.s32.totalorder %s1750_s11, %s1746_s10 }
   0x6   : > { %p67_p1 = scmp.eq.s32.totalorder %s66_s17, 0  ;;  %p80_p2 = scmp.eq.s32.totalorder %s1571_s13, 1 }
   0x7   : > { %p85_p3 = scmp.ne.s32.totalorder %s1746_s10, %s1742_s9  ;;  %p86_p4 = scmp.eq.s32.totalorder %s1572_s14, 1 }
   0x8   : > { %s1806_s18 = scalar_select %p67_p1, %s1750_s11, %s69_s16  }
   0x9   : > { %p1808_p5 = por %p80_p2, %p79_p0  ;;  %p1812_p6 = por %p86_p4, %p85_p3 }
   0xa   : > { %p1575_p7 = scmp.ge.s32.totalorder %s1754_s12, 1  ;;  %p117_p8 = scmp.lt.s32.totalorder %s1754_s12, 3 }
   0xc   : > { %p118_p9 = pnand %p1575_p7, %p117_p8 }
   0xd   : > { %s1818_s21 = sshll.u32 (!%p118_p9), %s1571_s13, 6  ;;  %s137_s3 = sand.u32 (!%p118_p9), 1, %s1746_s10  }
   0xe   : > { %121 = sbr.rel (%p118_p9) target bundleno = 756 (0x2f4), region = 28  ;;  %p141_p10 = scmp.lt.s32.totalorder (!%p118_p9), %s1818_s21, 127 }
   0xf   : > { %s1576_s4 = sshll.u32 (!%p118_p9), %s137_s3, 2  ;;  %s1511_s13 = scalar_lea.hbm (!%p118_p9), %s2500_s2, %s1818_s21 }
  0x10   : > { %s139_s5 = scalar_lea.vmem (!%p118_p9), [#allocation2], %s1576_s4  ;;  %s1499_s14 = scalar_lea.sflag (!%p118_p9), [#allocation3], %s137_s3 }
  0x11   : > { %s1513_s6 = sshll.u32 (!%p118_p9), %s139_s5, 4  ;;  %s1757_s17 = smov (!%p118_p9), [#allocation2]   ;;  %s1514_s6 = int_to_ptr.vmem [resolvable:$true] %s1513_s6 }
  0x12   : > { %s1694_s16 = scalar_lea.vmem (!%p118_p9), %s1514_s6, 64 }
  0x13   : > { %v662_v0 = vlaneseq  ;;  %s142_s22 = scalar_select %p141_p10, %s1818_s21, 127  ;;  %v1828_v2 = vld [vmem:[%s2498_s0] sm:$0xff]  ;;  %vm701_vm0 = vcmask 850944  }
  0x14   : > { %p1695_p11 = scmp.ne.s32.totalorder %s1514_s6, %s1694_s16 }
  0x15   : > { %v1822_v1 = vshrl.u32 %v662_v0, 7  ;;  %s1651_s25 = sshll.u32 %s142_s22, 6  ;;  %vm1495_vm1 = vcmp.lt.s32.totalorder %v662_v0, 512  ;;  %s1698_s22 = sshll.u32 %s1757_s17, 4  ;;  %s1699_s22 = int_to_ptr.vmem [resolvable:$false] %s1698_s22 }
  0x16   : > { %s1835_s28 = scalar_lea.vmem %s2499_s1, %s1651_s25  ;;  %p1696_p12 = pnand %p1695_p11, %p1808_p5 }
  0x17   : > { %v668_v3 = vsub.s32 1, %v1822_v1  ;;  %v676_v4 = vsub.s32 3, %v1822_v1  ;;  %v270_v5 = vld [vmem:[%s1835_s28 + $0x3c8] sm:$0xff]  ;;  %v272_v6 = vld [vmem:[%s1835_s28 + $0x3d8] sm:$0xff]  ;;  %v269_v7 = vld [vmem:[%s1835_s28 + $0x3c0] sm:$0xff]  ;;  %s1700_s23 = scalar_lea.vmem %s1699_s22, 128  ;;  %p1701_p0 = scmp.lt.s32.totalorder %s1514_s6, %s1699_s22 }
  0x18   : > { %896 = vmatprep.subr.mxu0 %v270_v5  ;;  %967 = vmatprep.subr.mxu1 %v272_v6  ;;  %v271_v10 = vld [vmem:[%s1835_s28 + $0x3d0] sm:$0xff]  ;;  %v262_v11 = vld [vmem:[%s1835_s28 + $0x388] sm:$0xff]  ;;  %v264_v12 = vld [vmem:[%s1835_s28 + $0x398] sm:$0xff]  ;;  %p1697_p13 = pneg %p1696_p12  ;;  %p1702_p1 = scmp.lt.s32.totalorder %s1700_s23, %s1694_s16 }
  0x19   : > { %v1841_v8 = vrot.slane %v1828_v2, %v668_v3  ;;  %v1844_v9 = vrot.slane %v1828_v2, %v676_v4  ;;  %897 = vmatpush1.xpose.msra.mxu0 %v269_v7  ;;  %968 = vmatpush1.xpose.msra.mxu1 %v271_v10  ;;  %v261_v13 = vld [vmem:[%s1835_s28 + $0x380] sm:$0xff]  ;;  %v263_v14 = vld [vmem:[%s1835_s28 + $0x390] sm:$0xff]  ;;  %v254_v15 = vld [vmem:[%s1835_s28 + $0x348] sm:$0xff] }
  0x1a   : > { %898 = vmatprep.subr.mxu0 %v262_v11  ;;  %969 = vmatprep.subr.mxu1 %v264_v12  ;;  %v256_v16 = vld [vmem:[%s1835_s28 + $0x358] sm:$0xff]  ;;  %v253_v17 = vld [vmem:[%s1835_s28 + $0x340] sm:$0xff]  ;;  %v255_v18 = vld [vmem:[%s1835_s28 + $0x350] sm:$0xff]  ;;  %p1703_p2 = por %p1702_p1, %p1701_p0 }
  0x1b   : > { %960 = vmatprep.mubr.f32.mxu0 %v1841_v8  ;;  %1031 = vmatprep.mubr.f32.mxu1 %v1844_v9  ;;  %v246_v19 = vld [vmem:[%s1835_s28 + $0x308] sm:$0xff]  ;;  %v248_v20 = vld [vmem:[%s1835_s28 + $0x318] sm:$0xff]  ;;  %v245_v21 = vld [vmem:[%s1835_s28 + $0x300] sm:$0xff] }
  0x1c   : > { %v247_v22 = vld [vmem:[%s1835_s28 + $0x310] sm:$0xff]  ;;  %v238_v23 = vld [vmem:[%s1835_s28 + $0x2c8] sm:$0xff]  ;;  %v240_v24 = vld [vmem:[%s1835_s28 + $0x2d8] sm:$0xff]  ;;  %p1704_p3 = pnand %p1703_p2, %p1697_p13 }
  0x1d   : > { %899 = vmatpush1.xpose.msra.mxu0 %v261_v13  ;;  %970 = vmatpush1.xpose.msra.mxu1 %v263_v14  ;;  %v237_v25 = vld [vmem:[%s1835_s28 + $0x2c0] sm:$0xff]  ;;  %v239_v26 = vld [vmem:[%s1835_s28 + $0x2d0] sm:$0xff]  ;;  %v230_v27 = vld [vmem:[%s1835_s28 + $0x288] sm:$0xff] }
  0x1e   : > { %900 = vmatprep.subr.mxu0 %v254_v15  ;;  %971 = vmatprep.subr.mxu1 %v256_v16  ;;  %v232_v28 = vld [vmem:[%s1835_s28 + $0x298] sm:$0xff]  ;;  %v229_v29 = vld [vmem:[%s1835_s28 + $0x280] sm:$0xff]  ;;  %v231_v30 = vld [vmem:[%s1835_s28 + $0x290] sm:$0xff] }
  0x1f   : > { %v222_v31 = vld [vmem:[%s1835_s28 + $0x248] sm:$0xff]  ;;  %v224_v32 = vld [vmem:[%s1835_s28 + $0x258] sm:$0xff]  ;;  %v221_v33 = vld [vmem:[%s1835_s28 + $0x240] sm:$0xff] }
  0x20   : > { %v223_v34 = vld [vmem:[%s1835_s28 + $0x250] sm:$0xff]  ;;  %v214_v35 = vld [vmem:[%s1835_s28 + $0x208] sm:$0xff]  ;;  %v216_v36 = vld [vmem:[%s1835_s28 + $0x218] sm:$0xff] }
  0x21   : > { %901 = vmatpush1.xpose.msra.mxu0 %v253_v17  ;;  %972 = vmatpush1.xpose.msra.mxu1 %v255_v18  ;;  %v213_v37 = vld [vmem:[%s1835_s28 + $0x200] sm:$0xff]  ;;  %v215_v38 = vld [vmem:[%s1835_s28 + $0x210] sm:$0xff]  ;;  %v206_v39 = vld [vmem:[%s1835_s28 + $0x1c8] sm:$0xff] }
  0x22   : > { %902 = vmatprep.subr.mxu0 %v246_v19  ;;  %973 = vmatprep.subr.mxu1 %v248_v20  ;;  %v208_v40 = vld [vmem:[%s1835_s28 + $0x1d8] sm:$0xff]  ;;  %v205_v41 = vld [vmem:[%s1835_s28 + $0x1c0] sm:$0xff]  ;;  %v207_v42 = vld [vmem:[%s1835_s28 + $0x1d0] sm:$0xff] }
  0x23   : > { %v198_v43 = vld [vmem:[%s1835_s28 + $0x188] sm:$0xff]  ;;  %v200_v44 = vld [vmem:[%s1835_s28 + $0x198] sm:$0xff]  ;;  %v197_v45 = vld [vmem:[%s1835_s28 + $0x180] sm:$0xff] }
  0x24   : > { %v199_v46 = vld [vmem:[%s1835_s28 + $0x190] sm:$0xff]  ;;  %v190_v47 = vld [vmem:[%s1835_s28 + $0x148] sm:$0xff]  ;;  %v192_v48 = vld [vmem:[%s1835_s28 + $0x158] sm:$0xff] }
  0x25   : > { %903 = vmatpush1.xpose.msra.mxu0 %v245_v21  ;;  %974 = vmatpush1.xpose.msra.mxu1 %v247_v22  ;;  %v189_v49 = vld [vmem:[%s1835_s28 + $0x140] sm:$0xff]  ;;  %v191_v50 = vld [vmem:[%s1835_s28 + $0x150] sm:$0xff]  ;;  %v182_v51 = vld [vmem:[%s1835_s28 + $0x108] sm:$0xff] }
  0x26   : > { %904 = vmatprep.subr.mxu0 %v238_v23  ;;  %975 = vmatprep.subr.mxu1 %v240_v24  ;;  %v184_v52 = vld [vmem:[%s1835_s28 + $0x118] sm:$0xff]  ;;  %v181_v53 = vld [vmem:[%s1835_s28 + $0x100] sm:$0xff]  ;;  %v183_v54 = vld [vmem:[%s1835_s28 + $0x110] sm:$0xff] }
  0x27   : > { %v174_v55 = vld [vmem:[%s1835_s28 + $0xc8] sm:$0xff]  ;;  %v176_v56 = vld [vmem:[%s1835_s28 + $0xd8] sm:$0xff]  ;;  %v173_v57 = vld [vmem:[%s1835_s28 + $0xc0] sm:$0xff] }
  0x28   : > { %v175_v58 = vld [vmem:[%s1835_s28 + $0xd0] sm:$0xff]  ;;  %v166_v59 = vld [vmem:[%s1835_s28 + $0x88] sm:$0xff]  ;;  %v168_v60 = vld [vmem:[%s1835_s28 + $0x98] sm:$0xff] }
  0x29   : > { %905 = vmatpush1.xpose.msra.mxu0 %v237_v25  ;;  %976 = vmatpush1.xpose.msra.mxu1 %v239_v26  ;;  %v165_v61 = vld [vmem:[%s1835_s28 + $0x80] sm:$0xff]  ;;  %v167_v62 = vld [vmem:[%s1835_s28 + $0x90] sm:$0xff]  ;;  %v158_v63 = vld [vmem:[%s1835_s28 + $0x48] sm:$0xff] }
  0x2a   : > { %906 = vmatprep.subr.mxu0 %v230_v27  ;;  %977 = vmatprep.subr.mxu1 %v232_v28  ;;  %v160_v3 = vld [vmem:[%s1835_s28 + $0x58] sm:$0xff]  ;;  %v157_v4 = vld [vmem:[%s1835_s28 + $0x40] sm:$0xff]  ;;  %v159_v5 = vld [vmem:[%s1835_s28 + $0x50] sm:$0xff] }
  0x2b   : > { %v150_v6 = vld [vmem:[%s1835_s28 + $0x8] sm:$0xff]  ;;  %v152_v7 = vld [vmem:[%s1835_s28 + $0x18] sm:$0xff]  ;;  %v149_v10 = vld [vmem:[%s1835_s28] sm:$0xff] }
  0x2c   : > { %v151_v11 = vld [vmem:[%s1835_s28 + $0x10] sm:$0xff]  ;;  %v398_v12 = vld [vmem:[%s1835_s28 + $0x7c8] sm:$0xff]  ;;  %v400_v13 = vld [vmem:[%s1835_s28 + $0x7d8] sm:$0xff] }
  0x2d   : > { %907 = vmatpush1.xpose.msra.mxu0 %v229_v29  ;;  %978 = vmatpush1.xpose.msra.mxu1 %v231_v30  ;;  %v397_v14 = vld [vmem:[%s1835_s28 + $0x7c0] sm:$0xff]  ;;  %v399_v15 = vld [vmem:[%s1835_s28 + $0x7d0] sm:$0xff]  ;;  %v390_v16 = vld [vmem:[%s1835_s28 + $0x788] sm:$0xff] }
  0x2e   : > { %908 = vmatprep.subr.mxu0 %v222_v31  ;;  %979 = vmatprep.subr.mxu1 %v224_v32  ;;  %v392_v17 = vld [vmem:[%s1835_s28 + $0x798] sm:$0xff]  ;;  %v389_v18 = vld [vmem:[%s1835_s28 + $0x780] sm:$0xff]  ;;  %v391_v19 = vld [vmem:[%s1835_s28 + $0x790] sm:$0xff] }
  0x2f   : > { %v382_v20 = vld [vmem:[%s1835_s28 + $0x748] sm:$0xff]  ;;  %v384_v21 = vld [vmem:[%s1835_s28 + $0x758] sm:$0xff]  ;;  %v381_v22 = vld [vmem:[%s1835_s28 + $0x740] sm:$0xff] }
  0x30   : > { %v383_v23 = vld [vmem:[%s1835_s28 + $0x750] sm:$0xff]  ;;  %v374_v24 = vld [vmem:[%s1835_s28 + $0x708] sm:$0xff]  ;;  %v376_v25 = vld [vmem:[%s1835_s28 + $0x718] sm:$0xff] }
  0x31   : > { %909 = vmatpush1.xpose.msra.mxu0 %v221_v33  ;;  %980 = vmatpush1.xpose.msra.mxu1 %v223_v34  ;;  %v373_v26 = vld [vmem:[%s1835_s28 + $0x700] sm:$0xff]  ;;  %v375_v27 = vld [vmem:[%s1835_s28 + $0x710] sm:$0xff]  ;;  %v366_v28 = vld [vmem:[%s1835_s28 + $0x6c8] sm:$0xff] }
  0x32   : > { %910 = vmatprep.subr.mxu0 %v214_v35  ;;  %981 = vmatprep.subr.mxu1 %v216_v36  ;;  %v368_v29 = vld [vmem:[%s1835_s28 + $0x6d8] sm:$0xff]  ;;  %v365_v30 = vld [vmem:[%s1835_s28 + $0x6c0] sm:$0xff]  ;;  %v367_v31 = vld [vmem:[%s1835_s28 + $0x6d0] sm:$0xff] }
  0x33   : > { %v358_v32 = vld [vmem:[%s1835_s28 + $0x688] sm:$0xff]  ;;  %v360_v33 = vld [vmem:[%s1835_s28 + $0x698] sm:$0xff]  ;;  %v357_v34 = vld [vmem:[%s1835_s28 + $0x680] sm:$0xff] }
  0x34   : > { %v359_v35 = vld [vmem:[%s1835_s28 + $0x690] sm:$0xff]  ;;  %v350_v36 = vld [vmem:[%s1835_s28 + $0x648] sm:$0xff] }
  0x35   : > { %911 = vmatpush1.xpose.msra.mxu0 %v213_v37  ;;  %982 = vmatpush1.xpose.msra.mxu1 %v215_v38  ;;  %v352_v37 = vld [vmem:[%s1835_s28 + $0x658] sm:$0xff]  ;;  %v349_v38 = vld [vmem:[%s1835_s28 + $0x640] sm:$0xff] }
  0x36   : > { %912 = vmatprep.subr.mxu0 %v206_v39  ;;  %983 = vmatprep.subr.mxu1 %v208_v40  ;;  %v351_v39 = vld [vmem:[%s1835_s28 + $0x650] sm:$0xff]  ;;  %v342_v40 = vld [vmem:[%s1835_s28 + $0x608] sm:$0xff] }
  0x39   : > { %913 = vmatpush1.xpose.msra.mxu0 %v205_v41  ;;  %984 = vmatpush1.xpose.msra.mxu1 %v207_v42  ;;  %v344_v41 = vld [vmem:[%s1835_s28 + $0x618] sm:$0xff]  ;;  %v341_v42 = vld [vmem:[%s1835_s28 + $0x600] sm:$0xff] }
  0x3a   : > { %914 = vmatprep.subr.mxu0 %v198_v43  ;;  %985 = vmatprep.subr.mxu1 %v200_v44  ;;  %v343_v43 = vld [vmem:[%s1835_s28 + $0x610] sm:$0xff]  ;;  %v334_v44 = vld [vmem:[%s1835_s28 + $0x5c8] sm:$0xff] }
  0x3d   : > { %915 = vmatpush1.xpose.msra.mxu0 %v197_v45  ;;  %986 = vmatpush1.xpose.msra.mxu1 %v199_v46  ;;  %v336_v45 = vld [vmem:[%s1835_s28 + $0x5d8] sm:$0xff]  ;;  %v333_v46 = vld [vmem:[%s1835_s28 + $0x5c0] sm:$0xff] }
  0x3e   : > { %916 = vmatprep.subr.mxu0 %v190_v47  ;;  %987 = vmatprep.subr.mxu1 %v192_v48  ;;  %v335_v47 = vld [vmem:[%s1835_s28 + $0x5d0] sm:$0xff]  ;;  %v326_v48 = vld [vmem:[%s1835_s28 + $0x588] sm:$0xff] }
  0x41   : > { %917 = vmatpush1.xpose.msra.mxu0 %v189_v49  ;;  %988 = vmatpush1.xpose.msra.mxu1 %v191_v50  ;;  %v328_v49 = vld [vmem:[%s1835_s28 + $0x598] sm:$0xff]  ;;  %v325_v50 = vld [vmem:[%s1835_s28 + $0x580] sm:$0xff] }
  0x42   : > { %918 = vmatprep.subr.mxu0 %v182_v51  ;;  %989 = vmatprep.subr.mxu1 %v184_v52  ;;  %v327_v51 = vld [vmem:[%s1835_s28 + $0x590] sm:$0xff]  ;;  %v318_v52 = vld [vmem:[%s1835_s28 + $0x548] sm:$0xff] }
  0x45   : > { %919 = vmatpush1.xpose.msra.mxu0 %v181_v53  ;;  %990 = vmatpush1.xpose.msra.mxu1 %v183_v54  ;;  %v320_v53 = vld [vmem:[%s1835_s28 + $0x558] sm:$0xff]  ;;  %v317_v54 = vld [vmem:[%s1835_s28 + $0x540] sm:$0xff] }
  0x46   : > { %920 = vmatprep.subr.mxu0 %v174_v55  ;;  %991 = vmatprep.subr.mxu1 %v176_v56  ;;  %v319_v55 = vld [vmem:[%s1835_s28 + $0x550] sm:$0xff]  ;;  %v310_v56 = vld [vmem:[%s1835_s28 + $0x508] sm:$0xff] }
  0x49   : > { %921 = vmatpush1.xpose.msra.mxu0 %v173_v57  ;;  %992 = vmatpush1.xpose.msra.mxu1 %v175_v58  ;;  %v312_v57 = vld [vmem:[%s1835_s28 + $0x518] sm:$0xff]  ;;  %v309_v58 = vld [vmem:[%s1835_s28 + $0x500] sm:$0xff] }
  0x4a   : > { %922 = vmatprep.subr.mxu0 %v166_v59  ;;  %993 = vmatprep.subr.mxu1 %v168_v60  ;;  %v311_v59 = vld [vmem:[%s1835_s28 + $0x510] sm:$0xff]  ;;  %v302_v60 = vld [vmem:[%s1835_s28 + $0x4c8] sm:$0xff] }
  0x4d   : > { %923 = vmatpush1.xpose.msra.mxu0 %v165_v61  ;;  %994 = vmatpush1.xpose.msra.mxu1 %v167_v62  ;;  %v304_v61 = vld [vmem:[%s1835_s28 + $0x4d8] sm:$0xff]  ;;  %v301_v62 = vld [vmem:[%s1835_s28 + $0x4c0] sm:$0xff] }
  0x4e   : > { %924 = vmatprep.subr.mxu0 %v158_v63  ;;  %995 = vmatprep.subr.mxu1 %v160_v3  ;;  %v303_v63 = vld [vmem:[%s1835_s28 + $0x4d0] sm:$0xff]  ;;  %v294_v3 = vld [vmem:[%s1835_s28 + $0x488] sm:$0xff] }
  0x51   : > { %925 = vmatpush1.xpose.msra.mxu0 %v157_v4  ;;  %996 = vmatpush1.xpose.msra.mxu1 %v159_v5  ;;  %v296_v4 = vld [vmem:[%s1835_s28 + $0x498] sm:$0xff]  ;;  %v293_v5 = vld [vmem:[%s1835_s28 + $0x480] sm:$0xff] }
  0x52   : > { %926 = vmatprep.subr.mxu0 %v150_v6  ;;  %997 = vmatprep.subr.mxu1 %v152_v7  ;;  %v295_v6 = vld [vmem:[%s1835_s28 + $0x490] sm:$0xff]  ;;  %v286_v7 = vld [vmem:[%s1835_s28 + $0x448] sm:$0xff] }
  0x55   : > { %927 = vmatpush1.xpose.msra.mxu0 %v149_v10  ;;  %998 = vmatpush1.xpose.msra.mxu1 %v151_v11  ;;  %v288_v10 = vld [vmem:[%s1835_s28 + $0x458] sm:$0xff]  ;;  %v285_v11 = vld [vmem:[%s1835_s28 + $0x440] sm:$0xff] }
  0x56   : > { %928 = vmatprep.subr.mxu0 %v398_v12  ;;  %999 = vmatprep.subr.mxu1 %v400_v13  ;;  %v287_v12 = vld [vmem:[%s1835_s28 + $0x450] sm:$0xff]  ;;  %v278_v13 = vld [vmem:[%s1835_s28 + $0x408] sm:$0xff] }
  0x59   : > { %929 = vmatpush2.xpose.msra.mxu0 %v397_v14  ;;  %1000 = vmatpush2.xpose.msra.mxu1 %v399_v15  ;;  %v280_v14 = vld [vmem:[%s1835_s28 + $0x418] sm:$0xff]  ;;  %v664_v15 = vsub.s32 0, %v1822_v1 }
  0x5a   : > { %930 = vmatprep.subr.mxu0 %v390_v16  ;;  %1001 = vmatprep.subr.mxu1 %v392_v17  ;;  %v672_v16 = vsub.s32 2, %v1822_v1  ;;  %v277_v17 = vld [vmem:[%s1835_s28 + $0x400] sm:$0xff] }
  0x5d   : > { %931 = vmatpush2.xpose.msra.mxu0 %v389_v18  ;;  %1002 = vmatpush2.xpose.msra.mxu1 %v391_v19  ;;  %v279_v18 = vld [vmem:[%s1835_s28 + $0x410] sm:$0xff]  ;;  %v274_v19 = vld [vmem:[%s1835_s28 + $0x3e8] sm:$0xff] }
  0x5e   : > { %932 = vmatprep.subr.mxu0 %v382_v20  ;;  %1003 = vmatprep.subr.mxu1 %v384_v21  ;;  %v276_v20 = vld [vmem:[%s1835_s28 + $0x3f8] sm:$0xff]  ;;  %v684_v21 = vsub.s32 5, %v1822_v1 }
  0x61   : > { %933 = vmatpush2.xpose.msra.mxu0 %v381_v22  ;;  %1004 = vmatpush2.xpose.msra.mxu1 %v383_v23  ;;  %v1979_v22 = vrot.slane %v1828_v2, %v664_v15  ;;  %v1982_v23 = vrot.slane %v1828_v2, %v672_v16  ;;  %v177_v15 = vld [vmem:[%s1835_s28 + $0xe0] sm:$0xff]  ;;  %v179_v16 = vld [vmem:[%s1835_s28 + $0xf0] sm:$0xff] }
  0x62   : > { %934 = vmatprep.subr.mxu0 %v374_v24  ;;  %1005 = vmatprep.subr.mxu1 %v376_v25  ;;  %v692_v24 = vsub.s32 7, %v1822_v1  ;;  %v273_v25 = vld [vmem:[%s1835_s28 + $0x3e0] sm:$0xff] }
  0x65   : > { %935 = vmatpush2.xpose.msra.mxu0 %v373_v26  ;;  %1006 = vmatpush2.xpose.msra.mxu1 %v375_v27  ;;  %v275_v26 = vld [vmem:[%s1835_s28 + $0x3f0] sm:$0xff]  ;;  %v266_v27 = vld [vmem:[%s1835_s28 + $0x3a8] sm:$0xff] }
  0x66   : > { %936 = vmatprep.subr.mxu0 %v366_v28  ;;  %1007 = vmatprep.subr.mxu1 %v368_v29  ;;  %v268_v28 = vld [vmem:[%s1835_s28 + $0x3b8] sm:$0xff]  ;;  %v1991_v29 = vrot.slane %v1828_v2, %v684_v21  ;;  %v162_v21 = vld [vmem:[%s1835_s28 + $0x68] sm:$0xff] }
  0x69   : > { %937 = vmatpush2.xpose.msra.mxu0 %v365_v30  ;;  %1008 = vmatpush2.xpose.msra.mxu1 %v367_v31  ;;  %v1994_v30 = vrot.slane %v1828_v2, %v692_v24  ;;  %v265_v31 = vld [vmem:[%s1835_s28 + $0x3a0] sm:$0xff]  ;;  %v164_v24 = vld [vmem:[%s1835_s28 + $0x78] sm:$0xff] }
  0x6a   : > { %938 = vmatprep.subr.mxu0 %v358_v32  ;;  %1009 = vmatprep.subr.mxu1 %v360_v33  ;;  %v267_v32 = vld [vmem:[%s1835_s28 + $0x3b0] sm:$0xff]  ;;  %v258_v33 = vld [vmem:[%s1835_s28 + $0x368] sm:$0xff]  ;;  %v257_v2 = vld [vmem:[%s1835_s28 + $0x360] sm:$0xff] }
  0x6d   : > { %939 = vmatpush2.xpose.msra.mxu0 %v357_v34  ;;  %1010 = vmatpush2.xpose.msra.mxu1 %v359_v35  ;;  %v260_v34 = vld [vmem:[%s1835_s28 + $0x378] sm:$0xff]  ;;  %v259_v35 = vld [vmem:[%s1835_s28 + $0x370] sm:$0xff] }
  0x6e   : > { %940 = vmatprep.subr.mxu0 %v350_v36  ;;  %1011 = vmatprep.subr.mxu1 %v352_v37  ;;  %v250_v36 = vld [vmem:[%s1835_s28 + $0x328] sm:$0xff]  ;;  %v252_v37 = vld [vmem:[%s1835_s28 + $0x338] sm:$0xff] }
  0x71   : > { %941 = vmatpush2.xpose.msra.mxu0 %v349_v38  ;;  %1012 = vmatpush2.xpose.msra.mxu1 %v351_v39  ;;  %v249_v38 = vld [vmem:[%s1835_s28 + $0x320] sm:$0xff]  ;;  %v251_v39 = vld [vmem:[%s1835_s28 + $0x330] sm:$0xff] }
  0x72   : > { %942 = vmatprep.subr.mxu0 %v342_v40  ;;  %1013 = vmatprep.subr.mxu1 %v344_v41  ;;  %v242_v40 = vld [vmem:[%s1835_s28 + $0x2e8] sm:$0xff]  ;;  %v244_v41 = vld [vmem:[%s1835_s28 + $0x2f8] sm:$0xff] }
  0x75   : > { %943 = vmatpush2.xpose.msra.mxu0 %v341_v42  ;;  %1014 = vmatpush2.xpose.msra.mxu1 %v343_v43  ;;  %v241_v42 = vld [vmem:[%s1835_s28 + $0x2e0] sm:$0xff]  ;;  %v243_v43 = vld [vmem:[%s1835_s28 + $0x2f0] sm:$0xff] }
  0x76   : > { %944 = vmatprep.subr.mxu0 %v334_v44  ;;  %1015 = vmatprep.subr.mxu1 %v336_v45  ;;  %v234_v44 = vld [vmem:[%s1835_s28 + $0x2a8] sm:$0xff]  ;;  %v236_v45 = vld [vmem:[%s1835_s28 + $0x2b8] sm:$0xff] }
  0x79   : > { %945 = vmatpush2.xpose.msra.mxu0 %v333_v46  ;;  %1016 = vmatpush2.xpose.msra.mxu1 %v335_v47  ;;  %v233_v46 = vld [vmem:[%s1835_s28 + $0x2a0] sm:$0xff]  ;;  %v235_v47 = vld [vmem:[%s1835_s28 + $0x2b0] sm:$0xff] }
  0x7a   : > { %946 = vmatprep.subr.mxu0 %v326_v48  ;;  %1017 = vmatprep.subr.mxu1 %v328_v49  ;;  %v226_v48 = vld [vmem:[%s1835_s28 + $0x268] sm:$0xff]  ;;  %v228_v49 = vld [vmem:[%s1835_s28 + $0x278] sm:$0xff] }
  0x7d   : > { %947 = vmatpush2.xpose.msra.mxu0 %v325_v50  ;;  %1018 = vmatpush2.xpose.msra.mxu1 %v327_v51  ;;  %v225_v50 = vld [vmem:[%s1835_s28 + $0x260] sm:$0xff]  ;;  %v227_v51 = vld [vmem:[%s1835_s28 + $0x270] sm:$0xff] }
  0x7e   : > { %948 = vmatprep.subr.mxu0 %v318_v52  ;;  %1019 = vmatprep.subr.mxu1 %v320_v53  ;;  %v218_v52 = vld [vmem:[%s1835_s28 + $0x228] sm:$0xff]  ;;  %v220_v53 = vld [vmem:[%s1835_s28 + $0x238] sm:$0xff] }
  0x81   : > { %949 = vmatpush2.xpose.msra.mxu0 %v317_v54  ;;  %1020 = vmatpush2.xpose.msra.mxu1 %v319_v55  ;;  %v217_v54 = vld [vmem:[%s1835_s28 + $0x220] sm:$0xff]  ;;  %v219_v55 = vld [vmem:[%s1835_s28 + $0x230] sm:$0xff] }
  0x82   : > { %950 = vmatprep.subr.mxu0 %v310_v56  ;;  %1021 = vmatprep.subr.mxu1 %v312_v57  ;;  %v210_v56 = vld [vmem:[%s1835_s28 + $0x1e8] sm:$0xff]  ;;  %v212_v57 = vld [vmem:[%s1835_s28 + $0x1f8] sm:$0xff] }
  0x85   : > { %951 = vmatpush2.xpose.msra.mxu0 %v309_v58  ;;  %1022 = vmatpush2.xpose.msra.mxu1 %v311_v59  ;;  %v209_v58 = vld [vmem:[%s1835_s28 + $0x1e0] sm:$0xff]  ;;  %v211_v59 = vld [vmem:[%s1835_s28 + $0x1f0] sm:$0xff] }
  0x86   : > { %952 = vmatprep.subr.mxu0 %v302_v60  ;;  %1023 = vmatprep.subr.mxu1 %v304_v61  ;;  %v202_v60 = vld [vmem:[%s1835_s28 + $0x1a8] sm:$0xff]  ;;  %v204_v61 = vld [vmem:[%s1835_s28 + $0x1b8] sm:$0xff] }
  0x89   : > { %953 = vmatpush2.xpose.msra.mxu0 %v301_v62  ;;  %1024 = vmatpush2.xpose.msra.mxu1 %v303_v63  ;;  %v201_v62 = vld [vmem:[%s1835_s28 + $0x1a0] sm:$0xff]  ;;  %v203_v63 = vld [vmem:[%s1835_s28 + $0x1b0] sm:$0xff] }
  0x8a   : > { %954 = vmatprep.subr.mxu0 %v294_v3  ;;  %1025 = vmatprep.subr.mxu1 %v296_v4  ;;  %v194_v3 = vld [vmem:[%s1835_s28 + $0x168] sm:$0xff]  ;;  %v196_v4 = vld [vmem:[%s1835_s28 + $0x178] sm:$0xff] }
  0x8d   : > { %955 = vmatpush2.xpose.msra.mxu0 %v293_v5  ;;  %1026 = vmatpush2.xpose.msra.mxu1 %v295_v6  ;;  %v193_v5 = vld [vmem:[%s1835_s28 + $0x160] sm:$0xff]  ;;  %v195_v6 = vld [vmem:[%s1835_s28 + $0x170] sm:$0xff] }
  0x8e   : > { %956 = vmatprep.subr.mxu0 %v286_v7  ;;  %1027 = vmatprep.subr.mxu1 %v288_v10  ;;  %v186_v7 = vld [vmem:[%s1835_s28 + $0x128] sm:$0xff]  ;;  %v188_v10 = vld [vmem:[%s1835_s28 + $0x138] sm:$0xff] }
  0x91   : > { %957 = vmatpush2.xpose.msra.mxu0 %v285_v11  ;;  %1028 = vmatpush2.xpose.msra.mxu1 %v287_v12  ;;  %v185_v11 = vld [vmem:[%s1835_s28 + $0x120] sm:$0xff]  ;;  %v187_v12 = vld [vmem:[%s1835_s28 + $0x130] sm:$0xff] }
  0x92   : > { %958 = vmatprep.subr.mxu0 %v278_v13  ;;  %1029 = vmatprep.subr.mxu1 %v280_v14  ;;  %v178_v13 = vld [vmem:[%s1835_s28 + $0xe8] sm:$0xff]  ;;  %v180_v14 = vld [vmem:[%s1835_s28 + $0xf8] sm:$0xff] }
  0x95   : > { %959 = vmatpush2.xpose.msra.mxu0 %v277_v17  ;;  %1030 = vmatpush2.xpose.msra.mxu1 %v279_v18  ;;  %v170_v17 = vld [vmem:[%s1835_s28 + $0xa8] sm:$0xff]  ;;  %v172_v18 = vld [vmem:[%s1835_s28 + $0xb8] sm:$0xff] }
  0x96   : > { %1038 = vmatprep.subr.mxu0 %v274_v19  ;;  %1580 = vmatprep.subr.msk.mxu1 %vm701_vm0, %v276_v20  ;;  %v169_v19 = vld [vmem:[%s1835_s28 + $0xa0] sm:$0xff]  ;;  %v171_v20 = vld [vmem:[%s1835_s28 + $0xb0] sm:$0xff] }
  0x98   : > { %961 = vmatmul.mubr.f32.vlgmr.msra.gmra.mxu0 %v1979_v22  ;;  %1032 = vmatmul.mubr.f32.vlgmr.msra.gmra.mxu1 %v1982_v23 }
  0x99   : > { %1039 = vmatpush1.xpose.msra.mxu0 %v273_v25  ;;  %1110 = vmatpush1.xpose.msra.mxu1 %v275_v26  ;;  %v161_v25 = vld [vmem:[%s1835_s28 + $0x60] sm:$0xff]  ;;  %v163_v26 = vld [vmem:[%s1835_s28 + $0x70] sm:$0xff] }
  0x9a   : > { %1040 = vmatprep.subr.mxu0 %v266_v27  ;;  %1581 = vmatprep.subr.msk.mxu1 %vm701_vm0, %v268_v28  ;;  %v154_v27 = vld [vmem:[%s1835_s28 + $0x28] sm:$0xff]  ;;  %v156_v28 = vld [vmem:[%s1835_s28 + $0x38] sm:$0xff] }
  0x9b   : > { %1102 = vmatprep.mubr.f32.mxu0 %v1991_v29  ;;  %1612 = vmatprep.mubr.msk.f32.mxu1 %vm701_vm0, %v1994_v30 }
  0x9d   : > { %1041 = vmatpush1.xpose.msra.mxu0 %v265_v31  ;;  %1112 = vmatpush1.xpose.msra.mxu1 %v267_v32  ;;  %v153_v31 = vld [vmem:[%s1835_s28 + $0x20] sm:$0xff]  ;;  %v155_v32 = vld [vmem:[%s1835_s28 + $0x30] sm:$0xff] }
  0x9e   : > { %1042 = vmatprep.subr.mxu0 %v258_v33  ;;  %1582 = vmatprep.subr.msk.mxu1 %vm701_vm0, %v260_v34  ;;  %v402_v33 = vld [vmem:[%s1835_s28 + $0x7e8] sm:$0xff]  ;;  %v404_v34 = vld [vmem:[%s1835_s28 + $0x7f8] sm:$0xff] }
  0xa1   : > { %1043 = vmatpush1.xpose.msra.mxu0 %v257_v2  ;;  %1114 = vmatpush1.xpose.msra.mxu1 %v259_v35  ;;  %v401_v2 = vld [vmem:[%s1835_s28 + $0x7e0] sm:$0xff]  ;;  %v403_v35 = vld [vmem:[%s1835_s28 + $0x7f0] sm:$0xff] }
  0xa2   : > { %1044 = vmatprep.subr.mxu0 %v250_v36  ;;  %1583 = vmatprep.subr.msk.mxu1 %vm701_vm0, %v252_v37  ;;  %v394_v36 = vld [vmem:[%s1835_s28 + $0x7a8] sm:$0xff]  ;;  %v396_v37 = vld [vmem:[%s1835_s28 + $0x7b8] sm:$0xff] }
  0xa5   : > { %1045 = vmatpush1.xpose.msra.mxu0 %v249_v38  ;;  %1116 = vmatpush1.xpose.msra.mxu1 %v251_v39  ;;  %v393_v38 = vld [vmem:[%s1835_s28 + $0x7a0] sm:$0xff]  ;;  %v395_v39 = vld [vmem:[%s1835_s28 + $0x7b0] sm:$0xff] }
  0xa6   : > { %1046 = vmatprep.subr.mxu0 %v242_v40  ;;  %1584 = vmatprep.subr.msk.mxu1 %vm701_vm0, %v244_v41  ;;  %v386_v40 = vld [vmem:[%s1835_s28 + $0x768] sm:$0xff]  ;;  %v388_v41 = vld [vmem:[%s1835_s28 + $0x778] sm:$0xff] }
  0xa9   : > { %1047 = vmatpush1.xpose.msra.mxu0 %v241_v42  ;;  %1118 = vmatpush1.xpose.msra.mxu1 %v243_v43  ;;  %v385_v42 = vld [vmem:[%s1835_s28 + $0x760] sm:$0xff]  ;;  %v387_v43 = vld [vmem:[%s1835_s28 + $0x770] sm:$0xff] }
  0xaa   : > { %1048 = vmatprep.subr.mxu0 %v234_v44  ;;  %1585 = vmatprep.subr.msk.mxu1 %vm701_vm0, %v236_v45  ;;  %v378_v44 = vld [vmem:[%s1835_s28 + $0x728] sm:$0xff]  ;;  %v380_v45 = vld [vmem:[%s1835_s28 + $0x738] sm:$0xff] }
  0xad   : > { %1049 = vmatpush1.xpose.msra.mxu0 %v233_v46  ;;  %1120 = vmatpush1.xpose.msra.mxu1 %v235_v47  ;;  %v377_v46 = vld [vmem:[%s1835_s28 + $0x720] sm:$0xff]  ;;  %v379_v47 = vld [vmem:[%s1835_s28 + $0x730] sm:$0xff] }
  0xae   : > { %1050 = vmatprep.subr.mxu0 %v226_v48  ;;  %1586 = vmatprep.subr.msk.mxu1 %vm701_vm0, %v228_v49  ;;  %v370_v48 = vld [vmem:[%s1835_s28 + $0x6e8] sm:$0xff]  ;;  %v372_v49 = vld [vmem:[%s1835_s28 + $0x6f8] sm:$0xff] }
  0xb1   : > { %1051 = vmatpush1.xpose.msra.mxu0 %v225_v50  ;;  %1122 = vmatpush1.xpose.msra.mxu1 %v227_v51  ;;  %v369_v50 = vld [vmem:[%s1835_s28 + $0x6e0] sm:$0xff]  ;;  %v371_v51 = vld [vmem:[%s1835_s28 + $0x6f0] sm:$0xff] }
  0xb2   : > { %1052 = vmatprep.subr.mxu0 %v218_v52  ;;  %1587 = vmatprep.subr.msk.mxu1 %vm701_vm0, %v220_v53  ;;  %v362_v52 = vld [vmem:[%s1835_s28 + $0x6a8] sm:$0xff]  ;;  %v364_v53 = vld [vmem:[%s1835_s28 + $0x6b8] sm:$0xff] }
  0xb5   : > { %1053 = vmatpush1.xpose.msra.mxu0 %v217_v54  ;;  %1124 = vmatpush1.xpose.msra.mxu1 %v219_v55  ;;  %v361_v54 = vld [vmem:[%s1835_s28 + $0x6a0] sm:$0xff]  ;;  %v363_v55 = vld [vmem:[%s1835_s28 + $0x6b0] sm:$0xff] }
  0xb6   : > { %1054 = vmatprep.subr.mxu0 %v210_v56  ;;  %1588 = vmatprep.subr.msk.mxu1 %vm701_vm0, %v212_v57  ;;  %v354_v56 = vld [vmem:[%s1835_s28 + $0x668] sm:$0xff]  ;;  %v356_v57 = vld [vmem:[%s1835_s28 + $0x678] sm:$0xff] }
  0xb9   : > { %1055 = vmatpush1.xpose.msra.mxu0 %v209_v58  ;;  %1126 = vmatpush1.xpose.msra.mxu1 %v211_v59  ;;  %v353_v58 = vld [vmem:[%s1835_s28 + $0x660] sm:$0xff]  ;;  %v355_v59 = vld [vmem:[%s1835_s28 + $0x670] sm:$0xff] }
  0xba   : > { %1056 = vmatprep.subr.mxu0 %v202_v60  ;;  %1589 = vmatprep.subr.msk.mxu1 %vm701_vm0, %v204_v61  ;;  %v346_v60 = vld [vmem:[%s1835_s28 + $0x628] sm:$0xff]  ;;  %v348_v61 = vld [vmem:[%s1835_s28 + $0x638] sm:$0xff] }
  0xbd   : > { %1057 = vmatpush1.xpose.msra.mxu0 %v201_v62  ;;  %1128 = vmatpush1.xpose.msra.mxu1 %v203_v63  ;;  %v345_v62 = vld [vmem:[%s1835_s28 + $0x620] sm:$0xff]  ;;  %v347_v63 = vld [vmem:[%s1835_s28 + $0x630] sm:$0xff] }
  0xbe   : > { %1058 = vmatprep.subr.mxu0 %v194_v3  ;;  %1590 = vmatprep.subr.msk.mxu1 %vm701_vm0, %v196_v4  ;;  %v338_v3 = vld [vmem:[%s1835_s28 + $0x5e8] sm:$0xff]  ;;  %v340_v4 = vld [vmem:[%s1835_s28 + $0x5f8] sm:$0xff] }
  0xc1   : > { %1059 = vmatpush1.xpose.msra.mxu0 %v193_v5  ;;  %1130 = vmatpush1.xpose.msra.mxu1 %v195_v6  ;;  %v337_v5 = vld [vmem:[%s1835_s28 + $0x5e0] sm:$0xff]  ;;  %v339_v6 = vld [vmem:[%s1835_s28 + $0x5f0] sm:$0xff] }
  0xc2   : > { %1060 = vmatprep.subr.mxu0 %v186_v7  ;;  %1591 = vmatprep.subr.msk.mxu1 %vm701_vm0, %v188_v10  ;;  %v330_v7 = vld [vmem:[%s1835_s28 + $0x5a8] sm:$0xff]  ;;  %v332_v10 = vld [vmem:[%s1835_s28 + $0x5b8] sm:$0xff] }
  0xc5   : > { %1061 = vmatpush1.xpose.msra.mxu0 %v185_v11  ;;  %1132 = vmatpush1.xpose.msra.mxu1 %v187_v12  ;;  %v329_v11 = vld [vmem:[%s1835_s28 + $0x5a0] sm:$0xff]  ;;  %v331_v12 = vld [vmem:[%s1835_s28 + $0x5b0] sm:$0xff] }
  0xc6   : > { %1062 = vmatprep.subr.mxu0 %v178_v13  ;;  %1592 = vmatprep.subr.msk.mxu1 %vm701_vm0, %v180_v14  ;;  %v322_v13 = vld [vmem:[%s1835_s28 + $0x568] sm:$0xff]  ;;  %v324_v14 = vld [vmem:[%s1835_s28 + $0x578] sm:$0xff] }
  0xc9   : > { %1063 = vmatpush1.xpose.msra.mxu0 %v177_v15  ;;  %1134 = vmatpush1.xpose.msra.mxu1 %v179_v16  ;;  %v321_v15 = vld [vmem:[%s1835_s28 + $0x560] sm:$0xff]  ;;  %v323_v16 = vld [vmem:[%s1835_s28 + $0x570] sm:$0xff] }
  0xca   : > { %1064 = vmatprep.subr.mxu0 %v170_v17  ;;  %1593 = vmatprep.subr.msk.mxu1 %vm701_vm0, %v172_v18  ;;  %v314_v17 = vld [vmem:[%s1835_s28 + $0x528] sm:$0xff]  ;;  %v316_v18 = vld [vmem:[%s1835_s28 + $0x538] sm:$0xff] }
  0xcd   : > { %1065 = vmatpush1.xpose.msra.mxu0 %v169_v19  ;;  %1136 = vmatpush1.xpose.msra.mxu1 %v171_v20  ;;  %v313_v19 = vld [vmem:[%s1835_s28 + $0x520] sm:$0xff]  ;;  %v315_v20 = vld [vmem:[%s1835_s28 + $0x530] sm:$0xff] }
  0xce   : > { %1066 = vmatprep.subr.mxu0 %v162_v21  ;;  %1594 = vmatprep.subr.msk.mxu1 %vm701_vm0, %v164_v24  ;;  %v306_v21 = vld [vmem:[%s1835_s28 + $0x4e8] sm:$0xff]  ;;  %v308_v24 = vld [vmem:[%s1835_s28 + $0x4f8] sm:$0xff] }
  0xd1   : > { %1067 = vmatpush1.xpose.msra.mxu0 %v161_v25  ;;  %1138 = vmatpush1.xpose.msra.mxu1 %v163_v26  ;;  %v305_v25 = vld [vmem:[%s1835_s28 + $0x4e0] sm:$0xff]  ;;  %v307_v26 = vld [vmem:[%s1835_s28 + $0x4f0] sm:$0xff] }
  0xd2   : > { %1068 = vmatprep.subr.mxu0 %v154_v27  ;;  %1595 = vmatprep.subr.msk.mxu1 %vm701_vm0, %v156_v28  ;;  %v298_v27 = vld [vmem:[%s1835_s28 + $0x4a8] sm:$0xff]  ;;  %v300_v28 = vld [vmem:[%s1835_s28 + $0x4b8] sm:$0xff] }
  0xd5   : > { %1069 = vmatpush1.xpose.msra.mxu0 %v153_v31  ;;  %1140 = vmatpush1.xpose.msra.mxu1 %v155_v32  ;;  %v297_v31 = vld [vmem:[%s1835_s28 + $0x4a0] sm:$0xff]  ;;  %v299_v32 = vld [vmem:[%s1835_s28 + $0x4b0] sm:$0xff] }
  0xd6   : > { %1070 = vmatprep.subr.mxu0 %v402_v33  ;;  %1596 = vmatprep.subr.msk.mxu1 %vm701_vm0, %v404_v34  ;;  %v290_v33 = vld [vmem:[%s1835_s28 + $0x468] sm:$0xff]  ;;  %v292_v34 = vld [vmem:[%s1835_s28 + $0x478] sm:$0xff] }
  0xd9   : > { %1071 = vmatpush2.xpose.msra.mxu0 %v401_v2  ;;  %1142 = vmatpush2.xpose.msra.mxu1 %v403_v35  ;;  %v289_v2 = vld [vmem:[%s1835_s28 + $0x460] sm:$0xff]  ;;  %v291_v35 = vld [vmem:[%s1835_s28 + $0x470] sm:$0xff] }
  0xda   : > { %1072 = vmatprep.subr.mxu0 %v394_v36  ;;  %1597 = vmatprep.subr.msk.mxu1 %vm701_vm0, %v396_v37  ;;  %v282_v36 = vld [vmem:[%s1835_s28 + $0x428] sm:$0xff]  ;;  %v284_v37 = vld [vmem:[%s1835_s28 + $0x438] sm:$0xff] }
  0xdd   : > { %1073 = vmatpush2.xpose.msra.mxu0 %v393_v38  ;;  %1144 = vmatpush2.xpose.msra.mxu1 %v395_v39  ;;  %v680_v38 = vsub.s32 4, %v1822_v1  ;;  %v688_v39 = vsub.s32 6, %v1822_v1 }
  0xde   : > { %1074 = vmatprep.subr.mxu0 %v386_v40  ;;  %1598 = vmatprep.subr.msk.mxu1 %vm701_vm0, %v388_v41  ;;  %v281_v40 = vld [vmem:[%s1835_s28 + $0x420] sm:$0xff]  ;;  %v283_v41 = vld [vmem:[%s1835_s28 + $0x430] sm:$0xff] }
  0xe1   : > { %1075 = vmatpush2.xpose.msra.mxu0 %v385_v42  ;;  %1146 = vmatpush2.xpose.msra.mxu1 %v387_v43  ;;  %v526_v42 = vld [vmem:[%s1835_s28 + $0xbc8] sm:$0xff]  ;;  %v528_v43 = vld [vmem:[%s1835_s28 + $0xbd8] sm:$0xff] }
  0xe2   : > { %1076 = vmatprep.subr.mxu0 %v378_v44  ;;  %1599 = vmatprep.subr.msk.mxu1 %vm701_vm0, %v380_v45  ;;  %v1693_v44 = vld [vmem:[%s2498_s0] sm:$0xff] }
  0xe3   : > { %v2161_v45 = vrot.slane %v1693_v44, %v680_v38  ;;  %v431_v38 = vld [vmem:[%s1835_s28 + $0x8d0] sm:$0xff] }
  0xe5   : > { %1077 = vmatpush2.xpose.msra.mxu0 %v377_v46  ;;  %1148 = vmatpush2.xpose.msra.mxu1 %v379_v47  ;;  %v2163_v46 = vrot.slane %v1693_v44, %v688_v39  ;;  %v525_v47 = vld [vmem:[%s1835_s28 + $0xbc0] sm:$0xff]  ;;  %v422_v39 = vld [vmem:[%s1835_s28 + $0x888] sm:$0xff]  ;;  %v416_v44 = vld [vmem:[%s1835_s28 + $0x858] sm:$0xff] }
  0xe6   : > { %1078 = vmatprep.subr.mxu0 %v370_v48  ;;  %1600 = vmatprep.subr.msk.mxu1 %vm701_vm0, %v372_v49  ;;  %v527_v48 = vld [vmem:[%s1835_s28 + $0xbd0] sm:$0xff]  ;;  %v518_v49 = vld [vmem:[%s1835_s28 + $0xb88] sm:$0xff] }
  0xe9   : > { %1079 = vmatpush2.xpose.msra.mxu0 %v369_v50  ;;  %1150 = vmatpush2.xpose.msra.mxu1 %v371_v51  ;;  %v520_v50 = vld [vmem:[%s1835_s28 + $0xb98] sm:$0xff]  ;;  %v517_v51 = vld [vmem:[%s1835_s28 + $0xb80] sm:$0xff] }
  0xea   : > { %1080 = vmatprep.subr.mxu0 %v362_v52  ;;  %1601 = vmatprep.subr.msk.mxu1 %vm701_vm0, %v364_v53  ;;  %v519_v52 = vld [vmem:[%s1835_s28 + $0xb90] sm:$0xff]  ;;  %v510_v53 = vld [vmem:[%s1835_s28 + $0xb48] sm:$0xff] }
  0xed   : > { %1081 = vmatpush2.xpose.msra.mxu0 %v361_v54  ;;  %1152 = vmatpush2.xpose.msra.mxu1 %v363_v55  ;;  %v512_v54 = vld [vmem:[%s1835_s28 + $0xb58] sm:$0xff]  ;;  %v509_v55 = vld [vmem:[%s1835_s28 + $0xb40] sm:$0xff] }
  0xee   : > { %1082 = vmatprep.subr.mxu0 %v354_v56  ;;  %1602 = vmatprep.subr.msk.mxu1 %vm701_vm0, %v356_v57  ;;  %v511_v56 = vld [vmem:[%s1835_s28 + $0xb50] sm:$0xff]  ;;  %v502_v57 = vld [vmem:[%s1835_s28 + $0xb08] sm:$0xff] }
  0xf1   : > { %1083 = vmatpush2.xpose.msra.mxu0 %v353_v58  ;;  %1154 = vmatpush2.xpose.msra.mxu1 %v355_v59  ;;  %v504_v58 = vld [vmem:[%s1835_s28 + $0xb18] sm:$0xff]  ;;  %v494_v59 = vld [vmem:[%s1835_s28 + $0xac8] sm:$0xff] }
  0xf2   : > { %1084 = vmatprep.subr.mxu0 %v346_v60  ;;  %1603 = vmatprep.subr.msk.mxu1 %vm701_vm0, %v348_v61  ;;  %v496_v60 = vld [vmem:[%s1835_s28 + $0xad8] sm:$0xff]  ;;  %v493_v61 = vld [vmem:[%s1835_s28 + $0xac0] sm:$0xff] }
  0xf5   : > { %1085 = vmatpush2.xpose.msra.mxu0 %v345_v62  ;;  %1156 = vmatpush2.xpose.msra.mxu1 %v347_v63  ;;  %v495_v62 = vld [vmem:[%s1835_s28 + $0xad0] sm:$0xff]  ;;  %v486_v63 = vld [vmem:[%s1835_s28 + $0xa88] sm:$0xff] }
  0xf6   : > { %1086 = vmatprep.subr.mxu0 %v338_v3  ;;  %1604 = vmatprep.subr.msk.mxu1 %vm701_vm0, %v340_v4  ;;  %v488_v3 = vld [vmem:[%s1835_s28 + $0xa98] sm:$0xff]  ;;  %v485_v4 = vld [vmem:[%s1835_s28 + $0xa80] sm:$0xff] }
  0xf9   : > { %1087 = vmatpush2.xpose.msra.mxu0 %v337_v5  ;;  %1158 = vmatpush2.xpose.msra.mxu1 %v339_v6  ;;  %v487_v5 = vld [vmem:[%s1835_s28 + $0xa90] sm:$0xff]  ;;  %v478_v6 = vld [vmem:[%s1835_s28 + $0xa48] sm:$0xff] }
  0xfa   : > { %1088 = vmatprep.subr.mxu0 %v330_v7  ;;  %1605 = vmatprep.subr.msk.mxu1 %vm701_vm0, %v332_v10  ;;  %v480_v7 = vld [vmem:[%s1835_s28 + $0xa58] sm:$0xff]  ;;  %v477_v10 = vld [vmem:[%s1835_s28 + $0xa40] sm:$0xff] }
  0xfd   : > { %1089 = vmatpush2.xpose.msra.mxu0 %v329_v11  ;;  %1160 = vmatpush2.xpose.msra.mxu1 %v331_v12  ;;  %v479_v11 = vld [vmem:[%s1835_s28 + $0xa50] sm:$0xff]  ;;  %v470_v12 = vld [vmem:[%s1835_s28 + $0xa08] sm:$0xff] }
  0xfe   : > { %1090 = vmatprep.subr.mxu0 %v322_v13  ;;  %1606 = vmatprep.subr.msk.mxu1 %vm701_vm0, %v324_v14  ;;  %v472_v13 = vld [vmem:[%s1835_s28 + $0xa18] sm:$0xff]  ;;  %v469_v14 = vld [vmem:[%s1835_s28 + $0xa00] sm:$0xff] }
 0x101   : > { %1091 = vmatpush2.xpose.msra.mxu0 %v321_v15  ;;  %1162 = vmatpush2.xpose.msra.mxu1 %v323_v16  ;;  %v471_v15 = vld [vmem:[%s1835_s28 + $0xa10] sm:$0xff]  ;;  %v462_v16 = vld [vmem:[%s1835_s28 + $0x9c8] sm:$0xff] }
 0x102   : > { %1092 = vmatprep.subr.mxu0 %v314_v17  ;;  %1607 = vmatprep.subr.msk.mxu1 %vm701_vm0, %v316_v18  ;;  %v464_v17 = vld [vmem:[%s1835_s28 + $0x9d8] sm:$0xff]  ;;  %v461_v18 = vld [vmem:[%s1835_s28 + $0x9c0] sm:$0xff] }
 0x105   : > { %1093 = vmatpush2.xpose.msra.mxu0 %v313_v19  ;;  %1164 = vmatpush2.xpose.msra.mxu1 %v315_v20  ;;  %v463_v19 = vld [vmem:[%s1835_s28 + $0x9d0] sm:$0xff]  ;;  %v454_v20 = vld [vmem:[%s1835_s28 + $0x988] sm:$0xff] }
 0x106   : > { %1094 = vmatprep.subr.mxu0 %v306_v21  ;;  %1608 = vmatprep.subr.msk.mxu1 %vm701_vm0, %v308_v24  ;;  %v456_v21 = vld [vmem:[%s1835_s28 + $0x998] sm:$0xff]  ;;  %v453_v24 = vld [vmem:[%s1835_s28 + $0x980] sm:$0xff] }
 0x109   : > { %1095 = vmatpush2.xpose.msra.mxu0 %v305_v25  ;;  %1166 = vmatpush2.xpose.msra.mxu1 %v307_v26  ;;  %v455_v25 = vld [vmem:[%s1835_s28 + $0x990] sm:$0xff]  ;;  %v446_v26 = vld [vmem:[%s1835_s28 + $0x948] sm:$0xff] }
 0x10a   : > { %1096 = vmatprep.subr.mxu0 %v298_v27  ;;  %1609 = vmatprep.subr.msk.mxu1 %vm701_vm0, %v300_v28  ;;  %v448_v27 = vld [vmem:[%s1835_s28 + $0x958] sm:$0xff]  ;;  %v445_v28 = vld [vmem:[%s1835_s28 + $0x940] sm:$0xff] }
 0x10d   : > { %1097 = vmatpush2.xpose.msra.mxu0 %v297_v31  ;;  %1168 = vmatpush2.xpose.msra.mxu1 %v299_v32  ;;  %v447_v31 = vld [vmem:[%s1835_s28 + $0x950] sm:$0xff]  ;;  %v438_v32 = vld [vmem:[%s1835_s28 + $0x908] sm:$0xff] }
 0x10e   : > { %1098 = vmatprep.subr.mxu0 %v290_v33  ;;  %1610 = vmatprep.subr.msk.mxu1 %vm701_vm0, %v292_v34  ;;  %v440_v33 = vld [vmem:[%s1835_s28 + $0x918] sm:$0xff]  ;;  %v437_v34 = vld [vmem:[%s1835_s28 + $0x900] sm:$0xff] }
 0x111   : > { %1099 = vmatpush2.xpose.msra.mxu0 %v289_v2  ;;  %1170 = vmatpush2.xpose.msra.mxu1 %v291_v35  ;;  %v439_v2 = vld [vmem:[%s1835_s28 + $0x910] sm:$0xff]  ;;  %v430_v35 = vld [vmem:[%s1835_s28 + $0x8c8] sm:$0xff] }
 0x112   : > { %1100 = vmatprep.subr.mxu0 %v282_v36  ;;  %1611 = vmatprep.subr.msk.mxu1 %vm701_vm0, %v284_v37  ;;  %v432_v36 = vld [vmem:[%s1835_s28 + $0x8d8] sm:$0xff]  ;;  %v429_v37 = vld [vmem:[%s1835_s28 + $0x8c0] sm:$0xff] }
 0x115   : > { %1101 = vmatpush2.xpose.msra.mxu0 %v281_v40  ;;  %1172 = vmatpush2.xpose.msra.mxu1 %v283_v41  ;;  %v424_v40 = vld [vmem:[%s1835_s28 + $0x898] sm:$0xff]  ;;  %v421_v41 = vld [vmem:[%s1835_s28 + $0x880] sm:$0xff] }
 0x116   : > { %1180 = vmatprep.subr.mxu0 %v526_v42  ;;  %1251 = vmatprep.subr.mxu1 %v528_v43  ;;  %v423_v42 = vld [vmem:[%s1835_s28 + $0x890] sm:$0xff]  ;;  %v414_v43 = vld [vmem:[%s1835_s28 + $0x848] sm:$0xff] }
 0x118   : > { %1103 = vmatmul.mubr.f32.vlgmr.msra.gmra.mxu0 %v2161_v45  ;;  %1174 = vmatmul.mubr.f32.vlgmr.msra.gmra.mxu1 %v2163_v46 }
 0x119   : > { %1181 = vmatpush1.xpose.msra.mxu0 %v525_v47  ;;  %1252 = vmatpush1.xpose.msra.mxu1 %v527_v48  ;;  %v413_v47 = vld [vmem:[%s1835_s28 + $0x840] sm:$0xff]  ;;  %v415_v48 = vld [vmem:[%s1835_s28 + $0x850] sm:$0xff] }
 0x11a   : > { %1182 = vmatprep.subr.mxu0 %v518_v49  ;;  %1253 = vmatprep.subr.mxu1 %v520_v50  ;;  %v406_v49 = vld [vmem:[%s1835_s28 + $0x808] sm:$0xff]  ;;  %v408_v50 = vld [vmem:[%s1835_s28 + $0x818] sm:$0xff] }
 0x11b   : > { %1244 = vmatprep.mubr.f32.mxu0 %v1841_v8  ;;  %1315 = vmatprep.mubr.f32.mxu1 %v1844_v9  ;;  %v501_v8 = vld [vmem:[%s1835_s28 + $0xb00] sm:$0xff]  ;;  %v503_v9 = vld [vmem:[%s1835_s28 + $0xb10] sm:$0xff] }
 0x11d   : > { %1183 = vmatpush1.xpose.msra.mxu0 %v517_v51  ;;  %1254 = vmatpush1.xpose.msra.mxu1 %v519_v52  ;;  %v405_v51 = vld [vmem:[%s1835_s28 + $0x800] sm:$0xff]  ;;  %v407_v52 = vld [vmem:[%s1835_s28 + $0x810] sm:$0xff] }
 0x11e   : > { %1184 = vmatprep.subr.mxu0 %v510_v53  ;;  %1255 = vmatprep.subr.mxu1 %v512_v54  ;;  %v654_v53 = vld [vmem:[%s1835_s28 + $0xfc8] sm:$0xff]  ;;  %v656_v54 = vld [vmem:[%s1835_s28 + $0xfd8] sm:$0xff] }
 0x121   : > { %1185 = vmatpush1.xpose.msra.mxu0 %v509_v55  ;;  %1256 = vmatpush1.xpose.msra.mxu1 %v511_v56  ;;  %v653_v55 = vld [vmem:[%s1835_s28 + $0xfc0] sm:$0xff]  ;;  %v655_v56 = vld [vmem:[%s1835_s28 + $0xfd0] sm:$0xff] }
 0x122   : > { %1186 = vmatprep.subr.mxu0 %v502_v57  ;;  %1257 = vmatprep.subr.mxu1 %v504_v58  ;;  %v646_v57 = vld [vmem:[%s1835_s28 + $0xf88] sm:$0xff]  ;;  %v648_v58 = vld [vmem:[%s1835_s28 + $0xf98] sm:$0xff] }
 0x125   : > { %1187 = vmatpush1.xpose.msra.mxu0 %v501_v8  ;;  %1258 = vmatpush1.xpose.msra.mxu1 %v503_v9  ;;  %v645_v8 = vld [vmem:[%s1835_s28 + $0xf80] sm:$0xff]  ;;  %v647_v9 = vld [vmem:[%s1835_s28 + $0xf90] sm:$0xff] }
 0x126   : > { %1188 = vmatprep.subr.mxu0 %v494_v59  ;;  %1259 = vmatprep.subr.mxu1 %v496_v60  ;;  %v638_v59 = vld [vmem:[%s1835_s28 + $0xf48] sm:$0xff]  ;;  %v640_v60 = vld [vmem:[%s1835_s28 + $0xf58] sm:$0xff] }
 0x129   : > { %1189 = vmatpush1.xpose.msra.mxu0 %v493_v61  ;;  %1260 = vmatpush1.xpose.msra.mxu1 %v495_v62  ;;  %v637_v61 = vld [vmem:[%s1835_s28 + $0xf40] sm:$0xff]  ;;  %v639_v62 = vld [vmem:[%s1835_s28 + $0xf50] sm:$0xff] }
 0x12a   : > { %1190 = vmatprep.subr.mxu0 %v486_v63  ;;  %1261 = vmatprep.subr.mxu1 %v488_v3  ;;  %v630_v63 = vld [vmem:[%s1835_s28 + $0xf08] sm:$0xff]  ;;  %v632_v3 = vld [vmem:[%s1835_s28 + $0xf18] sm:$0xff] }
 0x12d   : > { %1191 = vmatpush1.xpose.msra.mxu0 %v485_v4  ;;  %1262 = vmatpush1.xpose.msra.mxu1 %v487_v5  ;;  %v629_v4 = vld [vmem:[%s1835_s28 + $0xf00] sm:$0xff]  ;;  %v631_v5 = vld [vmem:[%s1835_s28 + $0xf10] sm:$0xff] }
 0x12e   : > { %1192 = vmatprep.subr.mxu0 %v478_v6  ;;  %1263 = vmatprep.subr.mxu1 %v480_v7  ;;  %v622_v6 = vld [vmem:[%s1835_s28 + $0xec8] sm:$0xff]  ;;  %v624_v7 = vld [vmem:[%s1835_s28 + $0xed8] sm:$0xff] }
 0x131   : > { %1193 = vmatpush1.xpose.msra.mxu0 %v477_v10  ;;  %1264 = vmatpush1.xpose.msra.mxu1 %v479_v11  ;;  %v621_v10 = vld [vmem:[%s1835_s28 + $0xec0] sm:$0xff]  ;;  %v623_v11 = vld [vmem:[%s1835_s28 + $0xed0] sm:$0xff] }
 0x132   : > { %1194 = vmatprep.subr.mxu0 %v470_v12  ;;  %1265 = vmatprep.subr.mxu1 %v472_v13  ;;  %v614_v12 = vld [vmem:[%s1835_s28 + $0xe88] sm:$0xff]  ;;  %v616_v13 = vld [vmem:[%s1835_s28 + $0xe98] sm:$0xff] }
 0x135   : > { %1195 = vmatpush1.xpose.msra.mxu0 %v469_v14  ;;  %1266 = vmatpush1.xpose.msra.mxu1 %v471_v15  ;;  %v613_v14 = vld [vmem:[%s1835_s28 + $0xe80] sm:$0xff]  ;;  %v615_v15 = vld [vmem:[%s1835_s28 + $0xe90] sm:$0xff] }
 0x136   : > { %1196 = vmatprep.subr.mxu0 %v462_v16  ;;  %1267 = vmatprep.subr.mxu1 %v464_v17  ;;  %v606_v16 = vld [vmem:[%s1835_s28 + $0xe48] sm:$0xff]  ;;  %v608_v17 = vld [vmem:[%s1835_s28 + $0xe58] sm:$0xff] }
 0x139   : > { %1197 = vmatpush1.xpose.msra.mxu0 %v461_v18  ;;  %1268 = vmatpush1.xpose.msra.mxu1 %v463_v19  ;;  %v605_v18 = vld [vmem:[%s1835_s28 + $0xe40] sm:$0xff]  ;;  %v607_v19 = vld [vmem:[%s1835_s28 + $0xe50] sm:$0xff] }
 0x13a   : > { %1198 = vmatprep.subr.mxu0 %v454_v20  ;;  %1269 = vmatprep.subr.mxu1 %v456_v21  ;;  %v598_v20 = vld [vmem:[%s1835_s28 + $0xe08] sm:$0xff]  ;;  %v600_v21 = vld [vmem:[%s1835_s28 + $0xe18] sm:$0xff] }
 0x13d   : > { %1199 = vmatpush1.xpose.msra.mxu0 %v453_v24  ;;  %1270 = vmatpush1.xpose.msra.mxu1 %v455_v25  ;;  %v597_v24 = vld [vmem:[%s1835_s28 + $0xe00] sm:$0xff]  ;;  %v599_v25 = vld [vmem:[%s1835_s28 + $0xe10] sm:$0xff] }
 0x13e   : > { %1200 = vmatprep.subr.mxu0 %v446_v26  ;;  %1271 = vmatprep.subr.mxu1 %v448_v27  ;;  %v590_v26 = vld [vmem:[%s1835_s28 + $0xdc8] sm:$0xff]  ;;  %v592_v27 = vld [vmem:[%s1835_s28 + $0xdd8] sm:$0xff] }
 0x141   : > { %1201 = vmatpush1.xpose.msra.mxu0 %v445_v28  ;;  %1272 = vmatpush1.xpose.msra.mxu1 %v447_v31  ;;  %v589_v28 = vld [vmem:[%s1835_s28 + $0xdc0] sm:$0xff]  ;;  %v591_v31 = vld [vmem:[%s1835_s28 + $0xdd0] sm:$0xff] }
 0x142   : > { %1202 = vmatprep.subr.mxu0 %v438_v32  ;;  %1273 = vmatprep.subr.mxu1 %v440_v33  ;;  %v582_v32 = vld [vmem:[%s1835_s28 + $0xd88] sm:$0xff]  ;;  %v584_v33 = vld [vmem:[%s1835_s28 + $0xd98] sm:$0xff] }
 0x145   : > { %1203 = vmatpush1.xpose.msra.mxu0 %v437_v34  ;;  %1274 = vmatpush1.xpose.msra.mxu1 %v439_v2  ;;  %v581_v34 = vld [vmem:[%s1835_s28 + $0xd80] sm:$0xff]  ;;  %v583_v2 = vld [vmem:[%s1835_s28 + $0xd90] sm:$0xff] }
 0x146   : > { %1204 = vmatprep.subr.mxu0 %v430_v35  ;;  %1275 = vmatprep.subr.mxu1 %v432_v36  ;;  %v574_v35 = vld [vmem:[%s1835_s28 + $0xd48] sm:$0xff]  ;;  %v576_v36 = vld [vmem:[%s1835_s28 + $0xd58] sm:$0xff] }
 0x149   : > { %1205 = vmatpush1.xpose.msra.mxu0 %v429_v37  ;;  %1276 = vmatpush1.xpose.msra.mxu1 %v431_v38  ;;  %v573_v37 = vld [vmem:[%s1835_s28 + $0xd40] sm:$0xff]  ;;  %v575_v38 = vld [vmem:[%s1835_s28 + $0xd50] sm:$0xff] }
 0x14a   : > { %1206 = vmatprep.subr.mxu0 %v422_v39  ;;  %1277 = vmatprep.subr.mxu1 %v424_v40  ;;  %v566_v39 = vld [vmem:[%s1835_s28 + $0xd08] sm:$0xff]  ;;  %v568_v40 = vld [vmem:[%s1835_s28 + $0xd18] sm:$0xff] }
 0x14d   : > { %1207 = vmatpush1.xpose.msra.mxu0 %v421_v41  ;;  %1278 = vmatpush1.xpose.msra.mxu1 %v423_v42  ;;  %v565_v41 = vld [vmem:[%s1835_s28 + $0xd00] sm:$0xff]  ;;  %v567_v42 = vld [vmem:[%s1835_s28 + $0xd10] sm:$0xff] }
 0x14e   : > { %1208 = vmatprep.subr.mxu0 %v414_v43  ;;  %1279 = vmatprep.subr.mxu1 %v416_v44  ;;  %v558_v43 = vld [vmem:[%s1835_s28 + $0xcc8] sm:$0xff]  ;;  %v560_v44 = vld [vmem:[%s1835_s28 + $0xcd8] sm:$0xff] }
 0x151   : > { %1209 = vmatpush1.xpose.msra.mxu0 %v413_v47  ;;  %1280 = vmatpush1.xpose.msra.mxu1 %v415_v48  ;;  %v557_v47 = vld [vmem:[%s1835_s28 + $0xcc0] sm:$0xff]  ;;  %v559_v48 = vld [vmem:[%s1835_s28 + $0xcd0] sm:$0xff] }
 0x152   : > { %1210 = vmatprep.subr.mxu0 %v406_v49  ;;  %1281 = vmatprep.subr.mxu1 %v408_v50  ;;  %v550_v49 = vld [vmem:[%s1835_s28 + $0xc88] sm:$0xff]  ;;  %v552_v50 = vld [vmem:[%s1835_s28 + $0xc98] sm:$0xff] }
 0x155   : > { %1211 = vmatpush1.xpose.msra.mxu0 %v405_v51  ;;  %1282 = vmatpush1.xpose.msra.mxu1 %v407_v52  ;;  %v549_v51 = vld [vmem:[%s1835_s28 + $0xc80] sm:$0xff]  ;;  %v551_v52 = vld [vmem:[%s1835_s28 + $0xc90] sm:$0xff] }
 0x156   : > { %1212 = vmatprep.subr.mxu0 %v654_v53  ;;  %1283 = vmatprep.subr.mxu1 %v656_v54  ;;  %v542_v53 = vld [vmem:[%s1835_s28 + $0xc48] sm:$0xff]  ;;  %v544_v54 = vld [vmem:[%s1835_s28 + $0xc58] sm:$0xff] }
 0x159   : > { %1213 = vmatpush2.xpose.msra.mxu0 %v653_v55  ;;  %1284 = vmatpush2.xpose.msra.mxu1 %v655_v56  ;;  %v541_v55 = vld [vmem:[%s1835_s28 + $0xc40] sm:$0xff]  ;;  %v543_v56 = vld [vmem:[%s1835_s28 + $0xc50] sm:$0xff] }
 0x15a   : > { %1214 = vmatprep.subr.mxu0 %v646_v57  ;;  %1285 = vmatprep.subr.mxu1 %v648_v58  ;;  %v534_v57 = vld [vmem:[%s1835_s28 + $0xc08] sm:$0xff]  ;;  %v536_v58 = vld [vmem:[%s1835_s28 + $0xc18] sm:$0xff] }
 0x15d   : > { %1215 = vmatpush2.xpose.msra.mxu0 %v645_v8  ;;  %1286 = vmatpush2.xpose.msra.mxu1 %v647_v9  ;;  %v533_v8 = vld [vmem:[%s1835_s28 + $0xc00] sm:$0xff]  ;;  %v535_v9 = vld [vmem:[%s1835_s28 + $0xc10] sm:$0xff] }
 0x15e   : > { %1216 = vmatprep.subr.mxu0 %v638_v59  ;;  %1287 = vmatprep.subr.mxu1 %v640_v60  ;;  %v530_v59 = vld [vmem:[%s1835_s28 + $0xbe8] sm:$0xff]  ;;  %v532_v60 = vld [vmem:[%s1835_s28 + $0xbf8] sm:$0xff] }
 0x161   : > { %1217 = vmatpush2.xpose.msra.mxu0 %v637_v61  ;;  %1288 = vmatpush2.xpose.msra.mxu1 %v639_v62  ;;  %v529_v61 = vld [vmem:[%s1835_s28 + $0xbe0] sm:$0xff]  ;;  %v531_v62 = vld [vmem:[%s1835_s28 + $0xbf0] sm:$0xff] }
 0x162   : > { %1218 = vmatprep.subr.mxu0 %v630_v63  ;;  %1289 = vmatprep.subr.mxu1 %v632_v3  ;;  %v522_v63 = vld [vmem:[%s1835_s28 + $0xba8] sm:$0xff]  ;;  %v524_v3 = vld [vmem:[%s1835_s28 + $0xbb8] sm:$0xff] }
 0x165   : > { %1219 = vmatpush2.xpose.msra.mxu0 %v629_v4  ;;  %1290 = vmatpush2.xpose.msra.mxu1 %v631_v5  ;;  %v521_v4 = vld [vmem:[%s1835_s28 + $0xba0] sm:$0xff]  ;;  %v523_v5 = vld [vmem:[%s1835_s28 + $0xbb0] sm:$0xff] }
 0x166   : > { %1220 = vmatprep.subr.mxu0 %v622_v6  ;;  %1291 = vmatprep.subr.mxu1 %v624_v7  ;;  %v514_v6 = vld [vmem:[%s1835_s28 + $0xb68] sm:$0xff]  ;;  %v516_v7 = vld [vmem:[%s1835_s28 + $0xb78] sm:$0xff] }
 0x169   : > { %1221 = vmatpush2.xpose.msra.mxu0 %v621_v10  ;;  %1292 = vmatpush2.xpose.msra.mxu1 %v623_v11  ;;  %v506_v10 = vld [vmem:[%s1835_s28 + $0xb28] sm:$0xff]  ;;  %v508_v11 = vld [vmem:[%s1835_s28 + $0xb38] sm:$0xff] }
 0x16a   : > { %1222 = vmatprep.subr.mxu0 %v614_v12  ;;  %1293 = vmatprep.subr.mxu1 %v616_v13  ;;  %v498_v12 = vld [vmem:[%s1835_s28 + $0xae8] sm:$0xff]  ;;  %v500_v13 = vld [vmem:[%s1835_s28 + $0xaf8] sm:$0xff] }
 0x16d   : > { %1223 = vmatpush2.xpose.msra.mxu0 %v613_v14  ;;  %1294 = vmatpush2.xpose.msra.mxu1 %v615_v15  ;;  %v497_v14 = vld [vmem:[%s1835_s28 + $0xae0] sm:$0xff]  ;;  %v499_v15 = vld [vmem:[%s1835_s28 + $0xaf0] sm:$0xff] }
 0x16e   : > { %1224 = vmatprep.subr.mxu0 %v606_v16  ;;  %1295 = vmatprep.subr.mxu1 %v608_v17  ;;  %v490_v16 = vld [vmem:[%s1835_s28 + $0xaa8] sm:$0xff]  ;;  %v492_v17 = vld [vmem:[%s1835_s28 + $0xab8] sm:$0xff] }
 0x171   : > { %1225 = vmatpush2.xpose.msra.mxu0 %v605_v18  ;;  %1296 = vmatpush2.xpose.msra.mxu1 %v607_v19  ;;  %v489_v18 = vld [vmem:[%s1835_s28 + $0xaa0] sm:$0xff]  ;;  %v491_v19 = vld [vmem:[%s1835_s28 + $0xab0] sm:$0xff] }
 0x172   : > { %1226 = vmatprep.subr.mxu0 %v598_v20  ;;  %1297 = vmatprep.subr.mxu1 %v600_v21  ;;  %v482_v20 = vld [vmem:[%s1835_s28 + $0xa68] sm:$0xff]  ;;  %v484_v21 = vld [vmem:[%s1835_s28 + $0xa78] sm:$0xff] }
 0x175   : > { %1227 = vmatpush2.xpose.msra.mxu0 %v597_v24  ;;  %1298 = vmatpush2.xpose.msra.mxu1 %v599_v25  ;;  %v481_v24 = vld [vmem:[%s1835_s28 + $0xa60] sm:$0xff]  ;;  %v483_v25 = vld [vmem:[%s1835_s28 + $0xa70] sm:$0xff] }
 0x176   : > { %1228 = vmatprep.subr.mxu0 %v590_v26  ;;  %1299 = vmatprep.subr.mxu1 %v592_v27  ;;  %v474_v26 = vld [vmem:[%s1835_s28 + $0xa28] sm:$0xff]  ;;  %v476_v27 = vld [vmem:[%s1835_s28 + $0xa38] sm:$0xff] }
 0x179   : > { %1229 = vmatpush2.xpose.msra.mxu0 %v589_v28  ;;  %1300 = vmatpush2.xpose.msra.mxu1 %v591_v31  ;;  %v473_v28 = vld [vmem:[%s1835_s28 + $0xa20] sm:$0xff]  ;;  %v475_v31 = vld [vmem:[%s1835_s28 + $0xa30] sm:$0xff] }
 0x17a   : > { %1230 = vmatprep.subr.mxu0 %v582_v32  ;;  %1301 = vmatprep.subr.mxu1 %v584_v33  ;;  %v466_v32 = vld [vmem:[%s1835_s28 + $0x9e8] sm:$0xff]  ;;  %v468_v33 = vld [vmem:[%s1835_s28 + $0x9f8] sm:$0xff] }
 0x17d   : > { %1231 = vmatpush2.xpose.msra.mxu0 %v581_v34  ;;  %1302 = vmatpush2.xpose.msra.mxu1 %v583_v2  ;;  %v465_v34 = vld [vmem:[%s1835_s28 + $0x9e0] sm:$0xff]  ;;  %v467_v2 = vld [vmem:[%s1835_s28 + $0x9f0] sm:$0xff] }
 0x17e   : > { %1232 = vmatprep.subr.mxu0 %v574_v35  ;;  %1303 = vmatprep.subr.mxu1 %v576_v36  ;;  %v458_v35 = vld [vmem:[%s1835_s28 + $0x9a8] sm:$0xff]  ;;  %v460_v36 = vld [vmem:[%s1835_s28 + $0x9b8] sm:$0xff] }
 0x181   : > { %1233 = vmatpush2.xpose.msra.mxu0 %v573_v37  ;;  %1304 = vmatpush2.xpose.msra.mxu1 %v575_v38  ;;  %v457_v37 = vld [vmem:[%s1835_s28 + $0x9a0] sm:$0xff]  ;;  %v459_v38 = vld [vmem:[%s1835_s28 + $0x9b0] sm:$0xff] }
 0x182   : > { %1234 = vmatprep.subr.mxu0 %v566_v39  ;;  %1305 = vmatprep.subr.mxu1 %v568_v40  ;;  %v450_v39 = vld [vmem:[%s1835_s28 + $0x968] sm:$0xff]  ;;  %v452_v40 = vld [vmem:[%s1835_s28 + $0x978] sm:$0xff] }
 0x185   : > { %1235 = vmatpush2.xpose.msra.mxu0 %v565_v41  ;;  %1306 = vmatpush2.xpose.msra.mxu1 %v567_v42  ;;  %v449_v41 = vld [vmem:[%s1835_s28 + $0x960] sm:$0xff]  ;;  %v451_v42 = vld [vmem:[%s1835_s28 + $0x970] sm:$0xff] }
 0x186   : > { %1236 = vmatprep.subr.mxu0 %v558_v43  ;;  %1307 = vmatprep.subr.mxu1 %v560_v44  ;;  %v442_v43 = vld [vmem:[%s1835_s28 + $0x928] sm:$0xff]  ;;  %v444_v44 = vld [vmem:[%s1835_s28 + $0x938] sm:$0xff] }
 0x189   : > { %1237 = vmatpush2.xpose.msra.mxu0 %v557_v47  ;;  %1308 = vmatpush2.xpose.msra.mxu1 %v559_v48  ;;  %v441_v47 = vld [vmem:[%s1835_s28 + $0x920] sm:$0xff]  ;;  %v443_v48 = vld [vmem:[%s1835_s28 + $0x930] sm:$0xff] }
 0x18a   : > { %1238 = vmatprep.subr.mxu0 %v550_v49  ;;  %1309 = vmatprep.subr.mxu1 %v552_v50  ;;  %v434_v49 = vld [vmem:[%s1835_s28 + $0x8e8] sm:$0xff]  ;;  %v436_v50 = vld [vmem:[%s1835_s28 + $0x8f8] sm:$0xff] }
 0x18d   : > { %1239 = vmatpush2.xpose.msra.mxu0 %v549_v51  ;;  %1310 = vmatpush2.xpose.msra.mxu1 %v551_v52  ;;  %v433_v51 = vld [vmem:[%s1835_s28 + $0x8e0] sm:$0xff]  ;;  %v435_v52 = vld [vmem:[%s1835_s28 + $0x8f0] sm:$0xff] }
 0x18e   : > { %1240 = vmatprep.subr.mxu0 %v542_v53  ;;  %1311 = vmatprep.subr.mxu1 %v544_v54  ;;  %v426_v53 = vld [vmem:[%s1835_s28 + $0x8a8] sm:$0xff]  ;;  %v428_v54 = vld [vmem:[%s1835_s28 + $0x8b8] sm:$0xff] }
 0x191   : > { %1241 = vmatpush2.xpose.msra.mxu0 %v541_v55  ;;  %1312 = vmatpush2.xpose.msra.mxu1 %v543_v56  ;;  %v425_v55 = vld [vmem:[%s1835_s28 + $0x8a0] sm:$0xff]  ;;  %v427_v56 = vld [vmem:[%s1835_s28 + $0x8b0] sm:$0xff] }
 0x192   : > { %1242 = vmatprep.subr.mxu0 %v534_v57  ;;  %1313 = vmatprep.subr.mxu1 %v536_v58  ;;  %v418_v57 = vld [vmem:[%s1835_s28 + $0x868] sm:$0xff]  ;;  %v420_v58 = vld [vmem:[%s1835_s28 + $0x878] sm:$0xff] }
 0x195   : > { %1243 = vmatpush2.xpose.msra.mxu0 %v533_v8  ;;  %1314 = vmatpush2.xpose.msra.mxu1 %v535_v9  ;;  %v417_v8 = vld [vmem:[%s1835_s28 + $0x860] sm:$0xff]  ;;  %v419_v9 = vld [vmem:[%s1835_s28 + $0x870] sm:$0xff] }
 0x196   : > { %1322 = vmatprep.subr.mxu0 %v530_v59  ;;  %1613 = vmatprep.subr.msk.mxu1 %vm701_vm0, %v532_v60  ;;  %v410_v59 = vld [vmem:[%s1835_s28 + $0x828] sm:$0xff]  ;;  %v412_v60 = vld [vmem:[%s1835_s28 + $0x838] sm:$0xff] }
 0x198   : > { %1245 = vmatmul.mubr.f32.vlgmr.msra.gmra.mxu0 %v1979_v22  ;;  %1316 = vmatmul.mubr.f32.vlgmr.msra.gmra.mxu1 %v1982_v23  ;;  %v513_v22 = vld [vmem:[%s1835_s28 + $0xb60] sm:$0xff]  ;;  %v515_v23 = vld [vmem:[%s1835_s28 + $0xb70] sm:$0xff] }
 0x199   : > { %1323 = vmatpush1.xpose.msra.mxu0 %v529_v61  ;;  %1394 = vmatpush1.xpose.msra.mxu1 %v531_v62  ;;  %v409_v61 = vld [vmem:[%s1835_s28 + $0x820] sm:$0xff]  ;;  %v411_v62 = vld [vmem:[%s1835_s28 + $0x830] sm:$0xff] }
 0x19a   : > { %1324 = vmatprep.subr.mxu0 %v522_v63  ;;  %1614 = vmatprep.subr.msk.mxu1 %vm701_vm0, %v524_v3  ;;  %v658_v63 = vld [vmem:[%s1835_s28 + $0xfe8] sm:$0xff]  ;;  %v660_v3 = vld [vmem:[%s1835_s28 + $0xff8] sm:$0xff] }
 0x19b   : > { %1386 = vmatprep.mubr.f32.mxu0 %v1991_v29  ;;  %1645 = vmatprep.mubr.msk.f32.mxu1 %vm701_vm0, %v1994_v30  ;;  %v505_v29 = vld [vmem:[%s1835_s28 + $0xb20] sm:$0xff]  ;;  %v507_v30 = vld [vmem:[%s1835_s28 + $0xb30] sm:$0xff] }
 0x19d   : > { %1325 = vmatpush1.xpose.msra.mxu0 %v521_v4  ;;  %1396 = vmatpush1.xpose.msra.mxu1 %v523_v5  ;;  %v657_v4 = vld [vmem:[%s1835_s28 + $0xfe0] sm:$0xff]  ;;  %v659_v5 = vld [vmem:[%s1835_s28 + $0xff0] sm:$0xff] }
 0x19e   : > { %1326 = vmatprep.subr.mxu0 %v514_v6  ;;  %1615 = vmatprep.subr.msk.mxu1 %vm701_vm0, %v516_v7  ;;  %v650_v6 = vld [vmem:[%s1835_s28 + $0xfa8] sm:$0xff]  ;;  %v652_v7 = vld [vmem:[%s1835_s28 + $0xfb8] sm:$0xff] }
 0x1a1   : > { %1327 = vmatpush1.xpose.msra.mxu0 %v513_v22  ;;  %1398 = vmatpush1.xpose.msra.mxu1 %v515_v23  ;;  %v649_v22 = vld [vmem:[%s1835_s28 + $0xfa0] sm:$0xff]  ;;  %v651_v23 = vld [vmem:[%s1835_s28 + $0xfb0] sm:$0xff] }
 0x1a2   : > { %1328 = vmatprep.subr.mxu0 %v506_v10  ;;  %1616 = vmatprep.subr.msk.mxu1 %vm701_vm0, %v508_v11  ;;  %v642_v10 = vld [vmem:[%s1835_s28 + $0xf68] sm:$0xff]  ;;  %v644_v11 = vld [vmem:[%s1835_s28 + $0xf78] sm:$0xff] }
 0x1a5   : > { %1329 = vmatpush1.xpose.msra.mxu0 %v505_v29  ;;  %1400 = vmatpush1.xpose.msra.mxu1 %v507_v30  ;;  %v641_v29 = vld [vmem:[%s1835_s28 + $0xf60] sm:$0xff]  ;;  %v643_v30 = vld [vmem:[%s1835_s28 + $0xf70] sm:$0xff] }
 0x1a6   : > { %1330 = vmatprep.subr.mxu0 %v498_v12  ;;  %1617 = vmatprep.subr.msk.mxu1 %vm701_vm0, %v500_v13  ;;  %v634_v12 = vld [vmem:[%s1835_s28 + $0xf28] sm:$0xff]  ;;  %v636_v13 = vld [vmem:[%s1835_s28 + $0xf38] sm:$0xff] }
 0x1a9   : > { %1331 = vmatpush1.xpose.msra.mxu0 %v497_v14  ;;  %1402 = vmatpush1.xpose.msra.mxu1 %v499_v15  ;;  %v633_v14 = vld [vmem:[%s1835_s28 + $0xf20] sm:$0xff]  ;;  %v635_v15 = vld [vmem:[%s1835_s28 + $0xf30] sm:$0xff] }
 0x1aa   : > { %1332 = vmatprep.subr.mxu0 %v490_v16  ;;  %1618 = vmatprep.subr.msk.mxu1 %vm701_vm0, %v492_v17  ;;  %v626_v16 = vld [vmem:[%s1835_s28 + $0xee8] sm:$0xff]  ;;  %v628_v17 = vld [vmem:[%s1835_s28 + $0xef8] sm:$0xff] }
 0x1ad   : > { %1333 = vmatpush1.xpose.msra.mxu0 %v489_v18  ;;  %1404 = vmatpush1.xpose.msra.mxu1 %v491_v19  ;;  %v625_v18 = vld [vmem:[%s1835_s28 + $0xee0] sm:$0xff]  ;;  %v627_v19 = vld [vmem:[%s1835_s28 + $0xef0] sm:$0xff] }
 0x1ae   : > { %1334 = vmatprep.subr.mxu0 %v482_v20  ;;  %1619 = vmatprep.subr.msk.mxu1 %vm701_vm0, %v484_v21  ;;  %v618_v20 = vld [vmem:[%s1835_s28 + $0xea8] sm:$0xff]  ;;  %v620_v21 = vld [vmem:[%s1835_s28 + $0xeb8] sm:$0xff] }
 0x1b1   : > { %1335 = vmatpush1.xpose.msra.mxu0 %v481_v24  ;;  %1406 = vmatpush1.xpose.msra.mxu1 %v483_v25  ;;  %v617_v24 = vld [vmem:[%s1835_s28 + $0xea0] sm:$0xff]  ;;  %v619_v25 = vld [vmem:[%s1835_s28 + $0xeb0] sm:$0xff] }
 0x1b2   : > { %1336 = vmatprep.subr.mxu0 %v474_v26  ;;  %1620 = vmatprep.subr.msk.mxu1 %vm701_vm0, %v476_v27  ;;  %v610_v26 = vld [vmem:[%s1835_s28 + $0xe68] sm:$0xff]  ;;  %v612_v27 = vld [vmem:[%s1835_s28 + $0xe78] sm:$0xff] }
 0x1b5   : > { %1337 = vmatpush1.xpose.msra.mxu0 %v473_v28  ;;  %1408 = vmatpush1.xpose.msra.mxu1 %v475_v31  ;;  %v609_v28 = vld [vmem:[%s1835_s28 + $0xe60] sm:$0xff]  ;;  %v611_v31 = vld [vmem:[%s1835_s28 + $0xe70] sm:$0xff] }
 0x1b6   : > { %1338 = vmatprep.subr.mxu0 %v466_v32  ;;  %1621 = vmatprep.subr.msk.mxu1 %vm701_vm0, %v468_v33  ;;  %v602_v32 = vld [vmem:[%s1835_s28 + $0xe28] sm:$0xff]  ;;  %v604_v33 = vld [vmem:[%s1835_s28 + $0xe38] sm:$0xff] }
 0x1b9   : > { %1339 = vmatpush1.xpose.msra.mxu0 %v465_v34  ;;  %1410 = vmatpush1.xpose.msra.mxu1 %v467_v2  ;;  %v601_v34 = vld [vmem:[%s1835_s28 + $0xe20] sm:$0xff]  ;;  %v603_v2 = vld [vmem:[%s1835_s28 + $0xe30] sm:$0xff] }
 0x1ba   : > { %1340 = vmatprep.subr.mxu0 %v458_v35  ;;  %1622 = vmatprep.subr.msk.mxu1 %vm701_vm0, %v460_v36  ;;  %v594_v35 = vld [vmem:[%s1835_s28 + $0xde8] sm:$0xff]  ;;  %v596_v36 = vld [vmem:[%s1835_s28 + $0xdf8] sm:$0xff] }
 0x1bd   : > { %1341 = vmatpush1.xpose.msra.mxu0 %v457_v37  ;;  %1412 = vmatpush1.xpose.msra.mxu1 %v459_v38  ;;  %v593_v37 = vld [vmem:[%s1835_s28 + $0xde0] sm:$0xff]  ;;  %v595_v38 = vld [vmem:[%s1835_s28 + $0xdf0] sm:$0xff] }
 0x1be   : > { %1342 = vmatprep.subr.mxu0 %v450_v39  ;;  %1623 = vmatprep.subr.msk.mxu1 %vm701_vm0, %v452_v40  ;;  %v586_v39 = vld [vmem:[%s1835_s28 + $0xda8] sm:$0xff]  ;;  %v588_v40 = vld [vmem:[%s1835_s28 + $0xdb8] sm:$0xff] }
 0x1c1   : > { %1343 = vmatpush1.xpose.msra.mxu0 %v449_v41  ;;  %1414 = vmatpush1.xpose.msra.mxu1 %v451_v42  ;;  %v585_v41 = vld [vmem:[%s1835_s28 + $0xda0] sm:$0xff]  ;;  %v587_v42 = vld [vmem:[%s1835_s28 + $0xdb0] sm:$0xff] }
 0x1c2   : > { %1344 = vmatprep.subr.mxu0 %v442_v43  ;;  %1624 = vmatprep.subr.msk.mxu1 %vm701_vm0, %v444_v44  ;;  %v578_v43 = vld [vmem:[%s1835_s28 + $0xd68] sm:$0xff]  ;;  %v580_v44 = vld [vmem:[%s1835_s28 + $0xd78] sm:$0xff] }
 0x1c5   : > { %1345 = vmatpush1.xpose.msra.mxu0 %v441_v47  ;;  %1416 = vmatpush1.xpose.msra.mxu1 %v443_v48  ;;  %v577_v47 = vld [vmem:[%s1835_s28 + $0xd60] sm:$0xff]  ;;  %v579_v48 = vld [vmem:[%s1835_s28 + $0xd70] sm:$0xff] }
 0x1c6   : > { %1346 = vmatprep.subr.mxu0 %v434_v49  ;;  %1625 = vmatprep.subr.msk.mxu1 %vm701_vm0, %v436_v50  ;;  %v570_v49 = vld [vmem:[%s1835_s28 + $0xd28] sm:$0xff]  ;;  %v572_v50 = vld [vmem:[%s1835_s28 + $0xd38] sm:$0xff] }
 0x1c9   : > { %1347 = vmatpush1.xpose.msra.mxu0 %v433_v51  ;;  %1418 = vmatpush1.xpose.msra.mxu1 %v435_v52  ;;  %v569_v51 = vld [vmem:[%s1835_s28 + $0xd20] sm:$0xff]  ;;  %v571_v52 = vld [vmem:[%s1835_s28 + $0xd30] sm:$0xff] }
 0x1ca   : > { %1348 = vmatprep.subr.mxu0 %v426_v53  ;;  %1626 = vmatprep.subr.msk.mxu1 %vm701_vm0, %v428_v54  ;;  %v562_v53 = vld [vmem:[%s1835_s28 + $0xce8] sm:$0xff]  ;;  %v564_v54 = vld [vmem:[%s1835_s28 + $0xcf8] sm:$0xff] }
 0x1cd   : > { %1349 = vmatpush1.xpose.msra.mxu0 %v425_v55  ;;  %1420 = vmatpush1.xpose.msra.mxu1 %v427_v56  ;;  %v561_v55 = vld [vmem:[%s1835_s28 + $0xce0] sm:$0xff]  ;;  %v563_v56 = vld [vmem:[%s1835_s28 + $0xcf0] sm:$0xff] }
 0x1ce   : > { %1350 = vmatprep.subr.mxu0 %v418_v57  ;;  %1627 = vmatprep.subr.msk.mxu1 %vm701_vm0, %v420_v58  ;;  %v554_v57 = vld [vmem:[%s1835_s28 + $0xca8] sm:$0xff]  ;;  %v556_v58 = vld [vmem:[%s1835_s28 + $0xcb8] sm:$0xff] }
 0x1d1   : > { %1351 = vmatpush1.xpose.msra.mxu0 %v417_v8  ;;  %1422 = vmatpush1.xpose.msra.mxu1 %v419_v9  ;;  %v553_v8 = vld [vmem:[%s1835_s28 + $0xca0] sm:$0xff]  ;;  %v555_v9 = vld [vmem:[%s1835_s28 + $0xcb0] sm:$0xff] }
 0x1d2   : > { %1352 = vmatprep.subr.mxu0 %v410_v59  ;;  %1628 = vmatprep.subr.msk.mxu1 %vm701_vm0, %v412_v60  ;;  %v546_v59 = vld [vmem:[%s1835_s28 + $0xc68] sm:$0xff]  ;;  %v548_v60 = vld [vmem:[%s1835_s28 + $0xc78] sm:$0xff] }
 0x1d5   : > { %1353 = vmatpush1.xpose.msra.mxu0 %v409_v61  ;;  %1424 = vmatpush1.xpose.msra.mxu1 %v411_v62  ;;  %v545_v61 = vld [vmem:[%s1835_s28 + $0xc60] sm:$0xff]  ;;  %v547_v62 = vld [vmem:[%s1835_s28 + $0xc70] sm:$0xff] }
 0x1d6   : > { %1354 = vmatprep.subr.mxu0 %v658_v63  ;;  %1629 = vmatprep.subr.msk.mxu1 %vm701_vm0, %v660_v3  ;;  %v538_v63 = vld [vmem:[%s1835_s28 + $0xc28] sm:$0xff]  ;;  %v540_v3 = vld [vmem:[%s1835_s28 + $0xc38] sm:$0xff] }
 0x1d9   : > { %1355 = vmatpush2.xpose.msra.mxu0 %v657_v4  ;;  %1426 = vmatpush2.xpose.msra.mxu1 %v659_v5  ;;  %v537_v4 = vld [vmem:[%s1835_s28 + $0xc20] sm:$0xff]  ;;  %v539_v5 = vld [vmem:[%s1835_s28 + $0xc30] sm:$0xff] }
 0x1da   : > { %1356 = vmatprep.subr.mxu0 %v650_v6  ;;  %1630 = vmatprep.subr.msk.mxu1 %vm701_vm0, %v652_v7  ;;  %v962_v6 = vpop.f32.mrf.mxu0  ;;  %v1033_v7 = vpop.f32.mrf.mxu1 }
 0x1dd   : > { %1357 = vmatpush2.xpose.msra.mxu0 %v649_v22  ;;  %1428 = vmatpush2.xpose.msra.mxu1 %v651_v23  ;;  %v964_v22 = vpop.f32.mrf.mxu0  ;;  %v1035_v23 = vpop.f32.mrf.mxu1 }
 0x1de   : > { %1358 = vmatprep.subr.mxu0 %v642_v10  ;;  %1631 = vmatprep.subr.msk.mxu1 %vm701_vm0, %v644_v11 }
 0x1df   : > { %v1104_v10 = vpop.f32.mrf.mxu0  ;;  %v1175_v11 = vpop.f32.mrf.mxu1 }
 0x1e1   : > { %1359 = vmatpush2.xpose.msra.mxu0 %v641_v29  ;;  %1430 = vmatpush2.xpose.msra.mxu1 %v643_v30  ;;  %v1106_v29 = vpop.f32.mrf.mxu0  ;;  %v1177_v30 = vpop.f32.mrf.mxu1 }
 0x1e2   : > { %1360 = vmatprep.subr.mxu0 %v634_v12  ;;  %1632 = vmatprep.subr.msk.mxu1 %vm701_vm0, %v636_v13 }
 0x1e5   : > { %1361 = vmatpush2.xpose.msra.mxu0 %v633_v14  ;;  %1432 = vmatpush2.xpose.msra.mxu1 %v635_v15  ;;  %v1036_v14 = vadd.f32 %v1035_v23, %v964_v22  ;;  %v1034_v15 = vadd.f32 %v1033_v7, %v962_v6 }
 0x1e6   : > { %1362 = vmatprep.subr.mxu0 %v626_v16  ;;  %1633 = vmatprep.subr.msk.mxu1 %vm701_vm0, %v628_v17  ;;  %v1756_v17 = vmov 1966171168  }
 0x1e7   : > { %v1107_v16 = vadd.f32 %v1106_v29, %v1036_v14 }
 0x1e9   : > { %1363 = vmatpush2.xpose.msra.mxu0 %v625_v18  ;;  %1434 = vmatpush2.xpose.msra.mxu1 %v627_v19  ;;  %v1471_v18 = vunpack.c.l.s4 %v1756_v17 }
 0x1ea   : > { %1364 = vmatprep.subr.mxu0 %v618_v20  ;;  %1634 = vmatprep.subr.msk.mxu1 %vm701_vm0, %v620_v21  ;;  %v1105_v20 = vadd.f32 %v1104_v10, %v1034_v15 }
 0x1ed   : > { %1365 = vmatpush2.xpose.msra.mxu0 %v617_v24  ;;  %1436 = vmatpush2.xpose.msra.mxu1 %v619_v25  ;;  %v1178_v25 = vadd.f32 %v1177_v30, %v1107_v16 }
 0x1ee   : > { %1366 = vmatprep.subr.mxu0 %v610_v26  ;;  %1635 = vmatprep.subr.msk.mxu1 %vm701_vm0, %v612_v27  ;;  %v1472_v26 = vunpack.c.0.s8 %v1471_v18 }
 0x1f1   : > { %1367 = vmatpush2.xpose.msra.mxu0 %v609_v28  ;;  %1438 = vmatpush2.xpose.msra.mxu1 %v611_v31 }
 0x1f2   : > { %1368 = vmatprep.subr.mxu0 %v602_v32  ;;  %1636 = vmatprep.subr.msk.mxu1 %vm701_vm0, %v604_v33  ;;  %v1176_v32 = vadd.f32 %v1175_v11, %v1105_v20 }
 0x1f5   : > { %1369 = vmatpush2.xpose.msra.mxu0 %v601_v34  ;;  %1440 = vmatpush2.xpose.msra.mxu1 %v603_v2  ;;  %v1468_v2 = vcombine.low %v1176_v32, %v1178_v25 }
 0x1f6   : > { %1370 = vmatprep.subr.mxu0 %v594_v35  ;;  %1637 = vmatprep.subr.msk.mxu1 %vm701_vm0, %v596_v36  ;;  %v1475_v35 = vsub.s32 %v1472_v26, %v1822_v1 }
 0x1f9   : > { %1371 = vmatpush2.xpose.msra.mxu0 %v593_v37  ;;  %1442 = vmatpush2.xpose.msra.mxu1 %v595_v38 }
 0x1fa   : > { %1372 = vmatprep.subr.mxu0 %v586_v39  ;;  %1638 = vmatprep.subr.msk.mxu1 %vm701_vm0, %v588_v40  ;;  %v1476_v39 = vrot.slane %v1468_v2, %v1475_v35 }
 0x1fd   : > { %1373 = vmatpush2.xpose.msra.mxu0 %v585_v41  ;;  %1444 = vmatpush2.xpose.msra.mxu1 %v587_v42 }
 0x1fe   : > { %1374 = vmatprep.subr.mxu0 %v578_v43  ;;  %1639 = vmatprep.subr.msk.mxu1 %vm701_vm0, %v580_v44 }
 0x201   : > { %1375 = vmatpush2.xpose.msra.mxu0 %v577_v47  ;;  %1446 = vmatpush2.xpose.msra.mxu1 %v579_v48 }
 0x202   : > { %1376 = vmatprep.subr.mxu0 %v570_v49  ;;  %1640 = vmatprep.subr.msk.mxu1 %vm701_vm0, %v572_v50 }
 0x205   : > { %1377 = vmatpush2.xpose.msra.mxu0 %v569_v51  ;;  %1448 = vmatpush2.xpose.msra.mxu1 %v571_v52 }
 0x206   : > { %1378 = vmatprep.subr.mxu0 %v562_v53  ;;  %1641 = vmatprep.subr.msk.mxu1 %vm701_vm0, %v564_v54 }
 0x209   : > { %1379 = vmatpush2.xpose.msra.mxu0 %v561_v55  ;;  %1450 = vmatpush2.xpose.msra.mxu1 %v563_v56 }
 0x20a   : > { %1380 = vmatprep.subr.mxu0 %v554_v57  ;;  %1642 = vmatprep.subr.msk.mxu1 %vm701_vm0, %v556_v58 }
 0x20d   : > { %1381 = vmatpush2.xpose.msra.mxu0 %v553_v8  ;;  %1452 = vmatpush2.xpose.msra.mxu1 %v555_v9 }
 0x20e   : > { %1382 = vmatprep.subr.mxu0 %v546_v59  ;;  %1643 = vmatprep.subr.msk.mxu1 %vm701_vm0, %v548_v60 }
 0x211   : > { %1383 = vmatpush2.xpose.msra.mxu0 %v545_v61  ;;  %1454 = vmatpush2.xpose.msra.mxu1 %v547_v62 }
 0x212   : > { %1384 = vmatprep.subr.mxu0 %v538_v63  ;;  %1644 = vmatprep.subr.msk.mxu1 %vm701_vm0, %v540_v3 }
 0x215   : > { %1385 = vmatpush2.xpose.msra.mxu0 %v537_v4  ;;  %1456 = vmatpush2.xpose.msra.mxu1 %v539_v5 }
 0x218   : > { %1387 = vmatmul.mubr.f32.vlgmr.msra.gmra.mxu0 %v2161_v45  ;;  %1458 = vmatmul.mubr.f32.vlgmr.msra.gmra.mxu1 %v2163_v46 }
 0x258   : > { %v1246_v12 = vpop.f32.mrf.mxu0  ;;  %v1317_v13 = vpop.f32.mrf.mxu1 }
 0x259   : > { %v1318_v46 = vadd.f32 %v1317_v13, %v1246_v12 }
 0x25a   : > { %v1248_v19 = vpop.f32.mrf.mxu0  ;;  %v1319_v45 = vpop.f32.mrf.mxu1 }
 0x25b   : > { %v1320_v27 = vadd.f32 %v1319_v45, %v1248_v19 }
 0x2d8   : > { %v1388_v21 = vpop.f32.mrf.mxu0  ;;  %v1459_v24 = vpop.f32.mrf.mxu1 }
 0x2d9   : > { %v1389_v28 = vadd.f32 %v1388_v21, %v1318_v46 }
 0x2da   : > { %v1390_v31 = vpop.f32.mrf.mxu0  ;;  %v1461_v34 = vpop.f32.mrf.mxu1 }
 0x2db   : > { %v1391_v33 = vadd.f32 %v1390_v31, %v1320_v27  ;;  %v1460_v36 = vadd.f32 %v1459_v24, %v1389_v28 }
 0x2dd   : > { %v1462_v37 = vadd.f32 %v1461_v34, %v1391_v33 }
 0x2df   : > { %v1469_v38 = vcombine.low %v1460_v36, %v1462_v37 }
 0x2e1   : > { %v1483_v40 = vrot.slane %v1469_v38, %v1475_v35 }
 0x2e3   : > { %v1484_v41 = vcombine.low %v1476_v39, %v1483_v40 }
 0x2e5   : > { %v1491_v42 = vrot.slane %v1484_v41, %v1475_v35 }
 0x2e7   : > { %1497 = vst.msk [vmem:[%s139_s5] sm:$0xf] %vm1495_vm1, %v1491_v42 }
 0x2e8   : > { %1707 = shalt.err (!%p1704_p3)
}
 0x2e9   : > { %s1708_s24 = scalar_lea.hbm %s1511_s13, 64  ;;  %s1712_s26 = scalar_lea.hbm %s2500_s2, 128 }
 0x2ea   : > { %p1709_p4 = scmp.ne.s32.totalorder %s1511_s13, %s1708_s24  ;;  %p1713_p9 = scmp.lt.s32.totalorder %s1511_s13, %s2500_s2 }
 0x2eb   : > { %p1714_p10 = scmp.lt.s32.totalorder %s1712_s26, %s1708_s24 }
 0x2ec   : > { %p1710_p7 = pnand %p1709_p4, %p1808_p5 }
 0x2ed   : > { %p1715_p11 = por %p1714_p10, %p1713_p9 }
 0x2ee   : > { %p1711_p8 = pneg %p1710_p7 }
 0x2f0   : > { %p1716_p12 = pnand %p1715_p11, %p1711_p8 }
 0x2f2   : > { %1719 = shalt.err (!%p1716_p12)
}
 0x2f3   : > { %1653 = dma.vmem_to_hbm [thread:$0]  (%p1808_p5), %s1514_s6, 64, %s1511_s13, %s1499_s14  }
 0x2f4 PF: > { %p1659_p13 = scmp.ge.s32.totalorder %s1754_s12, 2  ;;  %s1525_s29 = sand.u32 1, %s1742_s9  }
 0x2f5   : > { %s1526_s30 = scalar_lea.sflag [#allocation3], %s1525_s29 }
 0x2f6   : > { %p1656_p0 = pnand %p1659_p13, %p1812_p6 }
 0x2f8   : > { %p1657_p1 = pneg %p1656_p0 }
 0x2fa   : > { %1737 = dma.done.wait (%p1657_p1), %s1526_s30, 64  }
 0x2fb   : > { %1739 = vsyncadd (%p1657_p1), %s1526_s30, 4294967232  ;;  %p12_p2 = scmp.ge.s32.totalorder %s1796_s15, 4   ;;  %s2503_s9 = smov %s1746_s10 }
 0x2fc   : > { %s2504_s10 = smov %s1750_s11  ;;  %s2505_s11 = smov %s1806_s18 }
 0x2fd   : > { %s2506_s12 = smov %s1796_s15  ;;  %14 = sbr.rel (!%p12_p2) target bundleno = 3 (0x3), region = 63 }
 0x302   :  { %1531 = vsyncpa [#allocation3], 1 }
 0x303   :  { %1533 = vsyncpa [#allocation3 + $0x1], 1 }

</bundles_post_ra>
